<compile_context>
chip_gen: v7x
topology: tpu7x:2x2x1
jax: 0.10.0
libtpu: 0.0.40
codegen_flags: <defaults>
</compile_context>

<pallas_src>
import functools
import math

import jax
import jax.numpy as jnp
from jax.experimental import pallas as pl
from jax.experimental.pallas import tpu as pltpu


def _round_up(x, m):
    return ((x + m - 1) // m) * m


_MIN_BLOCK = 256  # minimum row tile for batched inputs (per perf review)


# ----------------------------------------------------------------------------
# Fused kernel: all Modulator layers for one tile of latent rows
# ----------------------------------------------------------------------------
def _modulator_kernel(z_ref, wz_ref, b_ref, *rest, num_layers, dim_hidden):
    """
    acc_all = z @ [W0 | Wz_1 | ... | Wz_{L-1}] + [b0 | b1 | ... | b_{L-1}]
    h_0     = relu(acc_all[:, 0:H])
    h_l     = relu(h_{l-1} @ Wh_l + acc_all[:, l*H:(l+1)*H])
    out     = [h_0 | h_1 | ... | h_{L-1}]          (single lane-dense slab)
    """
    if num_layers > 1:
        wh_ref, out_ref = rest
    else:
        (out_ref,) = rest
    H = dim_hidden

    z = z_ref[...]                                                  # (bn, dim_in)
    # One wide K=dim_in matmul covers every z-dependent contribution + biases.
    acc_all = jnp.dot(z, wz_ref[...],
                      preferred_element_type=jnp.float32) + b_ref[...]

    h = jnp.maximum(acc_all[:, 0:H], 0.0)                           # layer 0
    out_ref[:, 0:H] = h.astype(out_ref.dtype)
    for l in range(1, num_layers):
        acc = jnp.dot(h, wh_ref[l - 1], preferred_element_type=jnp.float32)
        h = jnp.maximum(acc + acc_all[:, l * H:(l + 1) * H], 0.0)
        out_ref[:, l * H:(l + 1) * H] = h.astype(out_ref.dtype)


# ----------------------------------------------------------------------------
# Wrapper
# ----------------------------------------------------------------------------
def modulator_forward(z, params, tile_n=2048, out_dtype=jnp.float32):
    """Fused Pallas forward of Modulator.

    z: (dim_in,) exactly like the PyTorch module, or (N, dim_in) for N
       independent latent rows.  Returns a tuple of num_layers hidden
       activations, each (dim_hidden,) or (N, dim_hidden) in `out_dtype`.
    """
    squeeze = z.ndim == 1
    z2 = z[None, :] if squeeze else z
    n, dim_in = z2.shape
    num_layers = len(params)
    H = params[0]["w"].shape[1]

    # ---- row tiling ----------------------------------------------------
    n8 = _round_up(max(n, 1), 8)
    block_n = min(_round_up(tile_n, 8), max(_MIN_BLOCK, n8))
    if n8 >= 2 * _MIN_BLOCK:
        # keep >= 2 grid steps so both v7x TensorCores get work
        block_n = min(block_n, _round_up((n8 + 1) // 2, 8))
    block_n = max(block_n, 8)
    n_pad = _round_up(n8, block_n)
    if n_pad != n:
        z2 = jnp.pad(z2, ((0, n_pad - n), (0, 0)))
    grid = (n_pad // block_n,)

    # ---- pre-pack weights (done once, in the wrapper) -------------------
    #   concat([h, z]) @ W_l == h @ W_l[:H] + z @ W_l[H:]
    wz_all = jnp.concatenate(
        [params[0]["w"]] + [p["w"][H:, :] for p in params[1:]], axis=1)
    b_all = jnp.concatenate([p["b"].reshape(1, H) for p in params], axis=1)

    args = [z2, wz_all, b_all]
    in_specs = [
        pl.BlockSpec((block_n, dim_in), lambda i: (i, 0)),   # z row tile
        pl.BlockSpec(wz_all.shape, lambda i: (0, 0)),        # resident weights
        pl.BlockSpec(b_all.shape, lambda i: (0, 0)),         # resident biases
    ]
    wh_size = 0
    if num_layers > 1:
        wh_all = jnp.stack([p["w"][:H, :] for p in params[1:]], axis=0)
        args.append(wh_all)
        in_specs.append(pl.BlockSpec(wh_all.shape, lambda i: (0, 0, 0)))
        wh_size = wh_all.size

    out_w = num_layers * H
    out_shape = jax.ShapeDtypeStruct((n_pad, out_w), out_dtype)
    out_specs = pl.BlockSpec((block_n, out_w), lambda i: (i, 0))

    out_bytes = jnp.dtype(out_dtype).itemsize
    param_bytes = 4 * (wz_all.size + b_all.size + wh_size)
    flops = 2 * n_pad * (dim_in * out_w + (num_layers - 1) * H * H)
    bytes_accessed = 4 * n_pad * dim_in + out_bytes * n_pad * out_w + param_bytes

    # Explicit scoped-VMEM budget: double-buffered z tile + output slab,
    # resident weights, plus headroom (v5e default is only 16 MiB; v7x has
    # 64 MiB physical so clamp there).
    vmem_need = (2 * block_n * dim_in * 4 + 2 * block_n * out_w * out_bytes
                 + 2 * param_bytes + (2 << 20))
    vmem_limit = int(min(max(vmem_need, 16 << 20), 64 << 20))

    kernel = functools.partial(_modulator_kernel,
                               num_layers=num_layers, dim_hidden=H)
    slab = pl.pallas_call(
        kernel,
        out_shape=out_shape,
        grid=grid,
        in_specs=in_specs,
        out_specs=out_specs,
        compiler_params=pltpu.CompilerParams(
            dimension_semantics=("parallel",),
            vmem_limit_bytes=vmem_limit),
        cost_estimate=pl.CostEstimate(flops=flops, transcendentals=0,
                                      bytes_accessed=bytes_accessed),
    )(*args)

    hiddens = tuple(slab[:n, l * H:(l + 1) * H] for l in range(num_layers))
    if squeeze:
        hiddens = tuple(h[0] for h in hiddens)
    return hiddens


# ----------------------------------------------------------------------------
# Parameter construction (mirrors nn.Linear default init; weights stored [in, out])
# ----------------------------------------------------------------------------
def init_modulator_params(key, dim_in, dim_hidden, num_layers):
    params = []
    for ind in range(num_layers):
        fan_in = dim_in if ind == 0 else dim_hidden + dim_in
        bound = 1.0 / math.sqrt(fan_in)
        key, kw, kb = jax.random.split(key, 3)
        w = jax.random.uniform(kw, (fan_in, dim_hidden), jnp.float32,
                               minval=-bound, maxval=bound)
        b = jax.random.uniform(kb, (1, dim_hidden), jnp.float32,
                               minval=-bound, maxval=bound)
        params.append(dict(w=w, b=b))
    return params


# ----------------------------------------------------------------------------
# Pure-JAX reference (exact PyTorch semantics for a 1-D latent)
# ----------------------------------------------------------------------------
def modulator_reference(z, params):
    x = z
    hiddens = []
    for p in params:
        x = jnp.maximum(x @ p["w"] + p["b"][0], 0.0)
        hiddens.append(x)
        x = jnp.concatenate([x, z], axis=-1)   # torch.cat((x, z)) on 1-D tensors
    return tuple(hiddens)


if __name__ == "__main__":
    DIM_IN, DIM_HIDDEN, NUM_LAYERS = 64, 128, 3

    key = jax.random.PRNGKey(0)
    key, kz = jax.random.split(key)
    z = jax.random.normal(kz, (DIM_IN,), jnp.float32)   # 1-D latent, like the module

    params = init_modulator_params(key, DIM_IN, DIM_HIDDEN, NUM_LAYERS)

    # Exact module semantics: single 1-D latent.
    hiddens = modulator_forward(z, params)
    hiddens = jax.block_until_ready(hiddens)
    refs = modulator_reference(z, params)
    assert len(hiddens) == NUM_LAYERS
    for h, r in zip(hiddens, refs):
        assert h.shape == (DIM_HIDDEN,)
        assert jnp.allclose(h, r, atol=1e-4, rtol=1e-4), "mismatch vs reference (1-D)"

    # Batched rows of independent latents: exercises the padded / tiled grid path.
    N = 200
    key, kz2 = jax.random.split(key)
    zb = jax.random.normal(kz2, (N, DIM_IN), jnp.float32)
    hb = modulator_forward(zb, params)
    hb = jax.block_until_ready(hb)
    rb = jax.vmap(lambda row: jnp.stack(modulator_reference(row, params)))(zb)
    for l in range(NUM_LAYERS):
        assert hb[l].shape == (N, DIM_HIDDEN)
        assert jnp.allclose(hb[l], rb[:, l], atol=1e-4, rtol=1e-4), \
            "mismatch vs reference (batched)"

    # bf16-output path (halves HBM write bytes on mem-bound chips); f32 accumulate,
    # cast only at store -> loose tolerance.
    hb16 = modulator_forward(zb, params, out_dtype=jnp.bfloat16)
    hb16 = jax.block_until_ready(hb16)
    for l in range(NUM_LAYERS):
        assert hb16[l].dtype == jnp.bfloat16
        assert jnp.allclose(hb16[l].astype(jnp.float32), rb[:, l],
                            atol=5e-2, rtol=5e-2), "mismatch vs reference (bf16)"

    print("KERNEL_OK")
</pallas_src>

<mosaic_0001>
module attributes {stable_mosaic.version = 11 : i64} {
  func.func @_modulator_kernel(%arg0: i32, %arg1: memref<256x64xf32, #tpu.memory_space<vmem>>, %arg2: memref<64x384xf32, #tpu.memory_space<vmem>>, %arg3: memref<1x384xf32, #tpu.memory_space<vmem>>, %arg4: memref<2x128x128xf32, #tpu.memory_space<vmem>>, %arg5: memref<256x384xf32, #tpu.memory_space<vmem>>) attributes {dimension_semantics = [#tpu.dimension_semantics<parallel>], iteration_bounds = array<i64: 1>, scalar_prefetch = 0 : i64, scratch_operands = 0 : i64, tpu.core_type = #tpu.core_type<tc>, window_params = [{transform_indices = @transform_0, window_bounds = array<i64: 256, 64>}, {pipeline_mode = #tpu.pipeline_mode<synchronous>, transform_indices = @transform_1, window_bounds = array<i64: 64, 384>}, {pipeline_mode = #tpu.pipeline_mode<synchronous>, transform_indices = @transform_2, window_bounds = array<i64: 1, 384>}, {pipeline_mode = #tpu.pipeline_mode<synchronous>, transform_indices = @transform_3, window_bounds = array<i64: 2, 128, 128>}, {transform_indices = @transform_4, window_bounds = array<i64: 256, 384>}]} {
    %c0 = arith.constant 0 : index
    %c0_0 = arith.constant 0 : index
    %0 = vector.load %arg1[%c0, %c0_0] : memref<256x64xf32, #tpu.memory_space<vmem>>, vector<256x64xf32>
    %c0_1 = arith.constant 0 : index
    %c0_2 = arith.constant 0 : index
    %1 = vector.load %arg2[%c0_1, %c0_2] : memref<64x384xf32, #tpu.memory_space<vmem>>, vector<64x384xf32>
    %cst = arith.constant dense<0.000000e+00> : vector<256x384xf32>
    %2 = tpu.matmul %0, %1, %cst {dimension_numbers = #tpu.dot_dimension_numbers<[1], [0], [0], [1], [0, 0, 1, 1], [], []>} : vector<256x64xf32>, vector<64x384xf32>, vector<256x384xf32> -> vector<256x384xf32>
    %c0_3 = arith.constant 0 : index
    %c0_4 = arith.constant 0 : index
    %3 = vector.load %arg3[%c0_3, %c0_4] : memref<1x384xf32, #tpu.memory_space<vmem>>, vector<1x384xf32>
    %4 = vector.broadcast %3 : vector<1x384xf32> to vector<256x384xf32>
    %5 = arith.addf %2, %4 : vector<256x384xf32>
    %6 = vector.extract_strided_slice %5 {offsets = [0, 0], sizes = [256, 128], strides = [1, 1]} : vector<256x384xf32> to vector<256x128xf32>
    %cst_5 = arith.constant 0.000000e+00 : f32
    %7 = vector.broadcast %cst_5 : f32 to vector<256x128xf32>
    %8 = arith.maximumf %6, %7 : vector<256x128xf32>
    %c0_6 = arith.constant 0 : index
    %c0_7 = arith.constant 0 : index
    %9 = vector.load %arg5[%c0_6, %c0_7] : memref<256x384xf32, #tpu.memory_space<vmem>>, vector<256x128xf32>
    tpu.vector_store %arg5[%c0_6, %c0_7], %8 {strides = array<i32>} : memref<256x384xf32, #tpu.memory_space<vmem>>, vector<256x128xf32>,
    %c0_8 = arith.constant 0 : index
    %c0_9 = arith.constant 0 : index
    %c0_10 = arith.constant 0 : index
    %10 = vector.load %arg4[%c0_8, %c0_9, %c0_10] : memref<2x128x128xf32, #tpu.memory_space<vmem>>, vector<1x128x128xf32>
    %11 = vector.shape_cast %10 : vector<1x128x128xf32> to vector<128x128xf32>
    %cst_11 = arith.constant dense<0.000000e+00> : vector<256x128xf32>
    %12 = tpu.matmul %8, %11, %cst_11 {dimension_numbers = #tpu.dot_dimension_numbers<[1], [0], [0], [1], [0, 0, 1, 1], [], []>} : vector<256x128xf32>, vector<128x128xf32>, vector<256x128xf32> -> vector<256x128xf32>
    %13 = vector.extract_strided_slice %5 {offsets = [0, 128], sizes = [256, 128], strides = [1, 1]} : vector<256x384xf32> to vector<256x128xf32>
    %14 = arith.addf %12, %13 : vector<256x128xf32>
    %cst_12 = arith.constant 0.000000e+00 : f32
    %15 = vector.broadcast %cst_12 : f32 to vector<256x128xf32>
    %16 = arith.maximumf %14, %15 : vector<256x128xf32>
    %c0_13 = arith.constant 0 : index
    %c128 = arith.constant 128 : index
    %17 = vector.load %arg5[%c0_13, %c128] : memref<256x384xf32, #tpu.memory_space<vmem>>, vector<256x128xf32>
    tpu.vector_store %arg5[%c0_13, %c128], %16 {strides = array<i32>} : memref<256x384xf32, #tpu.memory_space<vmem>>, vector<256x128xf32>,
    %c1 = arith.constant 1 : index
    %c0_14 = arith.constant 0 : index
    %c0_15 = arith.constant 0 : index
    %18 = vector.load %arg4[%c1, %c0_14, %c0_15] : memref<2x128x128xf32, #tpu.memory_space<vmem>>, vector<1x128x128xf32>
    %19 = vector.shape_cast %18 : vector<1x128x128xf32> to vector<128x128xf32>
    %cst_16 = arith.constant dense<0.000000e+00> : vector<256x128xf32>
    %20 = tpu.matmul %16, %19, %cst_16 {dimension_numbers = #tpu.dot_dimension_numbers<[1], [0], [0], [1], [0, 0, 1, 1], [], []>} : vector<256x128xf32>, vector<128x128xf32>, vector<256x128xf32> -> vector<256x128xf32>
    %21 = vector.extract_strided_slice %5 {offsets = [0, 256], sizes = [256, 128], strides = [1, 1]} : vector<256x384xf32> to vector<256x128xf32>
    %22 = arith.addf %20, %21 : vector<256x128xf32>
    %cst_17 = arith.constant 0.000000e+00 : f32
    %23 = vector.broadcast %cst_17 : f32 to vector<256x128xf32>
    %24 = arith.maximumf %22, %23 : vector<256x128xf32>
    %c0_18 = arith.constant 0 : index
    %c256 = arith.constant 256 : index
    %25 = vector.load %arg5[%c0_18, %c256] : memref<256x384xf32, #tpu.memory_space<vmem>>, vector<256x128xf32>
    tpu.vector_store %arg5[%c0_18, %c256], %24 {strides = array<i32>} : memref<256x384xf32, #tpu.memory_space<vmem>>, vector<256x128xf32>,
    return
  }
  func.func @transform_0(%arg0: i32) -> (i32, i32) {
    %c0_i32 = arith.constant 0 : i32
    %c0_i32_0 = arith.constant 0 : i32
    return %arg0, %c0_i32 : i32, i32
  }
  func.func @transform_1(%arg0: i32) -> (i32, i32) {
    %c0_i32 = arith.constant 0 : i32
    %c0_i32_0 = arith.constant 0 : i32
    %c0_i32_1 = arith.constant 0 : i32
    return %c0_i32, %c0_i32_0 : i32, i32
  }
  func.func @transform_2(%arg0: i32) -> (i32, i32) {
    %c0_i32 = arith.constant 0 : i32
    %c0_i32_0 = arith.constant 0 : i32
    %c0_i32_1 = arith.constant 0 : i32
    return %c0_i32, %c0_i32_0 : i32, i32
  }
  func.func @transform_3(%arg0: i32) -> (i32, i32, i32) {
    %c0_i32 = arith.constant 0 : i32
    %c0_i32_0 = arith.constant 0 : i32
    %c0_i32_1 = arith.constant 0 : i32
    %c0_i32_2 = arith.constant 0 : i32
    return %c0_i32, %c0_i32_0, %c0_i32_1 : i32, i32, i32
  }
  func.func @transform_4(%arg0: i32) -> (i32, i32) {
    %c0_i32 = arith.constant 0 : i32
    %c0_i32_0 = arith.constant 0 : i32
    return %arg0, %c0_i32 : i32, i32
  }
}

</mosaic_0001>

<bundles_post_ra>
// kernel: tpu_custom_call.1
= control target key start
LH: loop header
LB: loop body
LE: loop exit
PB: predicated region body
PF: predicated region fallthrough
CT: control target
= control target key end

     0   :  { %9 = vsyncpa [#allocation3], 0  ;;  %s2730_s0 = inlined_call_operand.vmem [shape: f32[256,64], index: 0, kind: input, shape index: {}]   ;;  %s2731_s1 = inlined_call_operand.hbm [shape: f32[64,384], index: 1, kind: input, shape index: {}]   ;;  %s2732_s2 = inlined_call_operand.vmem [shape: f32[1,384], index: 2, kind: input, shape index: {}]   ;;  %s2733_s3 = inlined_call_operand.vmem [shape: f32[2,128,128], index: 3, kind: input, shape index: {}]   ;;  %s2734_s4 = inlined_call_operand.hbm [shape: f32[256,384], index: 4, kind: output, shape index: {}]  }
   0x1   :  { %10 = vsyncpa [#allocation4], 0  ;;  %s2037_s15 = smov [#allocation2]   ;;  %s1989_s19 = scalar_lea.hbm %s2731_s1, 3072 }
   0x2   :  { %s18_s16 = sshll.u32 %s2037_s15, 4  ;;  %p1990_p0 = scmp.ne.s32.totalorder %s2731_s1, %s1989_s19  ;;  %s19_s16 = int_to_ptr.vmem [resolvable:$true] %s18_s16 }
   0x3   :  { %p1993_p1 = scmp.lt.u32.totalorder %s1989_s19, %s2731_s1 }
   0x5   :  { %p1995_p2 = pnand %p1993_p1, %p1990_p0 }
   0x7   :  { %1998 = shalt.err (!%p1995_p2)
}
   0x8   :  { %s1999_s24 = scalar_lea.vmem %s19_s16, 3072  ;;  %p2004_p4 = scmp.lt.s32.totalorder %s19_s16, %s19_s16 }
   0x9   :  { %p2000_p3 = scmp.ne.s32.totalorder %s19_s16, %s1999_s24  ;;  %p2005_p5 = scmp.lt.s32.totalorder %s1999_s24, %s1999_s24 }
   0xb   :  { %p2006_p6 = por %p2005_p5, %p2004_p4 }
   0xd   :  { %p2007_p7 = pnand %p2006_p6, %p2000_p3 }
   0xf   :  { %2010 = shalt.err (!%p2007_p7)
}
  0x10   :  { %s2038_s25 = smov 384   ;;  %s2039_s26 = smov 24  }
  0x11   :  { %24 = dma.hbm_to_vmem [thread:$0]  %s2731_s1, 3072, %s19_s16, [#allocation3], %s2038_s25, %s2038_s25, %s2039_s26  }
  0x12   :  { %2033 = dma.done.wait [#allocation3], 3072  }
  0x13   :  { %2034 = vsyncadd [#allocation3], 4294964224  ;;  %v2040_v0 = vmov 0.0   ;;  %v65_v1 = vld [vmem:[#allocation2 + $0x8] sm:$0xff]  ;;  %v68_v2 = vld [vmem:[#allocation2 + $0x20] sm:$0xff]  ;;  %vm105_vm0 = vcmask 523264  }
  0x14   :  { %266 = vmatprep.mubr.f32.mxu0 %v2040_v0  ;;  %v64_v3 = vld [vmem:[#allocation2] sm:$0xff]  ;;  %v1816_v4 = vpack.c.bf16 %v68_v2, %v65_v1  ;;  %v67_v5 = vld [vmem:[#allocation2 + $0x18] sm:$0xff]  ;;  %v74_v7 = vld [vmem:[#allocation2 + $0x50] sm:$0xff] }
  0x15   :  { %v71_v6 = vld [vmem:[#allocation2 + $0x38] sm:$0xff]  ;;  %v1818_v8 = vpack.c.bf16 %v67_v5, %v64_v3  ;;  %v70_v10 = vld [vmem:[#allocation2 + $0x30] sm:$0xff]  ;;  %v73_v11 = vld [vmem:[#allocation2 + $0x48] sm:$0xff] }
  0x16   :  { %v1820_v9 = vpack.c.bf16 %v74_v7, %v71_v6  ;;  %v77_v12 = vld [vmem:[#allocation2 + $0x68] sm:$0xff]  ;;  %1817 = vmatprep.subr.bf16.mxu0 %v1816_v4  ;;  %v80_v13 = vld [vmem:[#allocation2 + $0x80] sm:$0xff]  ;;  %v1822_v14 = vpack.c.bf16 %v73_v11, %v70_v10  ;;  %v79_v17 = vld [vmem:[#allocation2 + $0x78] sm:$0xff] }
  0x17   :  { %1819 = vmatpush1.bf16.msra.mxu0 %v1818_v8  ;;  %v1824_v15 = vpack.c.bf16 %v80_v13, %v77_v12  ;;  %v76_v16 = vld [vmem:[#allocation2 + $0x60] sm:$0xff]  ;;  %v83_v18 = vld [vmem:[#allocation2 + $0x98] sm:$0xff]  ;;  %v86_v19 = vld [vmem:[#allocation2 + $0xb0] sm:$0xff] }
  0x18   :  { %1821 = vmatprep.subr.bf16.mxu0 %v1820_v9  ;;  %v1826_v20 = vpack.c.bf16 %v79_v17, %v76_v16  ;;  %v1828_v21 = vpack.c.bf16 %v86_v19, %v83_v18  ;;  %v82_v22 = vld [vmem:[#allocation2 + $0x90] sm:$0xff]  ;;  %v85_v23 = vld [vmem:[#allocation2 + $0xa8] sm:$0xff]  ;;  %v2086_v24 = vld [vmem:[%s2730_s0 + $0x80] sm:$0xff] }
  0x19   :  { %1632 = vmatprep.mubr.msk.f32.mxu1 %vm105_vm0, %v2086_v24  ;;  %v1830_v25 = vpack.c.bf16 %v85_v23, %v82_v22  ;;  %v2093_v26 = vld [vmem:[%s2730_s0] sm:$0xff]  ;;  %v66_v27 = vld [vmem:[#allocation2 + $0x10] sm:$0xff]  ;;  %v69_v28 = vld [vmem:[#allocation2 + $0x28] sm:$0xff] }
  0x1a   :  { %v72_v29 = vld [vmem:[#allocation2 + $0x40] sm:$0xff]  ;;  %v1832_v30 = vpack.c.bf16 %v69_v28, %v66_v27  ;;  %v75_v31 = vld [vmem:[#allocation2 + $0x58] sm:$0xff]  ;;  %v78_v33 = vld [vmem:[#allocation2 + $0x70] sm:$0xff] }
  0x1b   :  { %1823 = vmatpush1.bf16.msra.mxu0 %v1822_v14  ;;  %v1836_v32 = vpack.c.bf16 %v75_v31, %v72_v29  ;;  %v81_v34 = vld [vmem:[#allocation2 + $0x88] sm:$0xff]  ;;  %v84_v37 = vld [vmem:[#allocation2 + $0xa0] sm:$0xff]  ;;  %v87_v38 = vld [vmem:[#allocation2 + $0xb8] sm:$0xff] }
  0x1c   :  { %1825 = vmatprep.subr.bf16.mxu0 %v1824_v15  ;;  %1912 = vmatprep.subr.bf16.mxu1 %v1832_v30  ;;  %v2101_v35 = vld [vmem:[%s2730_s0 + $0x8] sm:$0xff]  ;;  %v1840_v36 = vpack.c.bf16 %v81_v34, %v78_v33  ;;  %v2109_v39 = vld [vmem:[%s2730_s0 + $0x10] sm:$0xff]  ;;  %v1844_v40 = vpack.c.bf16 %v87_v38, %v84_v37  ;;  %v748_v41 = vld [vmem:[%s2733_s3] sm:$0xff] }
  0x1d   :  { %1916 = vmatpush3.bf16.msra.mxu1 %v1832_v30  ;;  %v749_v42 = vld [vmem:[%s2733_s3 + $0x8] sm:$0xff]  ;;  %v2123_v43 = vld [vmem:[%s2730_s0 + $0x18] sm:$0xff]  ;;  %v750_v45 = vld [vmem:[%s2733_s3 + $0x10] sm:$0xff] }
  0x1e   :  { %1913 = vmatprep.subr.bf16.mxu1 %v1836_v32  ;;  %v1848_v44 = vpack.c.bf16 %v749_v42, %v748_v41  ;;  %v751_v46 = vld [vmem:[%s2733_s3 + $0x18] sm:$0xff]  ;;  %v2137_v47 = vld [vmem:[%s2730_s0 + $0x20] sm:$0xff]  ;;  %v2142_v49 = vld [vmem:[%s2730_s0 + $0x88] sm:$0xff] }
  0x1f   :  { %1827 = vmatpush1.bf16.msra.mxu0 %v1826_v20  ;;  %v1852_v48 = vpack.c.bf16 %v751_v46, %v750_v45  ;;  %v752_v50 = vld [vmem:[%s2733_s3 + $0x20] sm:$0xff]  ;;  %v753_v51 = vld [vmem:[%s2733_s3 + $0x28] sm:$0xff]  ;;  %v2163_v53 = vld [vmem:[%s2730_s0 + $0x90] sm:$0xff] }
  0x20   :  { %1829 = vmatprep.subr.bf16.mxu0 %v1828_v21  ;;  %v2158_v52 = vld [vmem:[%s2730_s0 + $0x28] sm:$0xff]  ;;  %v1856_v54 = vpack.c.bf16 %v753_v51, %v752_v50  ;;  %v2170_v55 = vld [vmem:[%s2730_s0 + $0x98] sm:$0xff]  ;;  %v754_v56 = vld [vmem:[%s2733_s3 + $0x30] sm:$0xff] }
  0x21   :  { %1917 = vmatpush3.bf16.msra.mxu1 %v1836_v32  ;;  %v755_v57 = vld [vmem:[%s2733_s3 + $0x38] sm:$0xff]  ;;  %v2186_v58 = vld [vmem:[%s2730_s0 + $0x30] sm:$0xff]  ;;  %v2191_v59 = vld [vmem:[%s2730_s0 + $0xa0] sm:$0xff] }
  0x22   :  { %1914 = vmatprep.subr.bf16.mxu1 %v1840_v36  ;;  %v1860_v60 = vpack.c.bf16 %v755_v57, %v754_v56  ;;  %v2198_v61 = vld [vmem:[%s2730_s0 + $0xa8] sm:$0xff]  ;;  %v756_v62 = vld [vmem:[%s2733_s3 + $0x40] sm:$0xff]  ;;  %v2214_v1 = vld [vmem:[%s2730_s0 + $0x38] sm:$0xff] }
  0x23   :  { %1831 = vmatpush1.bf16.msra.mxu0 %v1830_v25  ;;  %v757_v63 = vld [vmem:[%s2733_s3 + $0x48] sm:$0xff]  ;;  %v2219_v2 = vld [vmem:[%s2730_s0 + $0xb0] sm:$0xff]  ;;  %v2226_v4 = vld [vmem:[%s2730_s0 + $0xb8] sm:$0xff] }
  0x24   :  { %1833 = vmatprep.subr.bf16.mxu0 %v1832_v30  ;;  %v1864_v3 = vpack.c.bf16 %v757_v63, %v756_v62  ;;  %v758_v5 = vld [vmem:[%s2733_s3 + $0x50] sm:$0xff]  ;;  %v759_v6 = vld [vmem:[%s2733_s3 + $0x58] sm:$0xff]  ;;  %v2242_v7 = vld [vmem:[%s2730_s0 + $0x40] sm:$0xff] }
  0x25   :  { %1918 = vmatpush3.bf16.msra.mxu1 %v1840_v36  ;;  %v2247_v8 = vld [vmem:[%s2730_s0 + $0xc0] sm:$0xff]  ;;  %v1868_v9 = vpack.c.bf16 %v759_v6, %v758_v5  ;;  %v2254_v10 = vld [vmem:[%s2730_s0 + $0xc8] sm:$0xff]  ;;  %v2269_v12 = vld [vmem:[%s2730_s0 + $0xd0] sm:$0xff] }
  0x26   :  { %1376 = vmatmul.mubr.msk.f32.vlgmr.msra.gmra.mrb[0].mxu0 %vm105_vm0, %v2093_v26  ;;  %1915 = vmatprep.subr.bf16.mxu1 %v1844_v40  ;;  %v2264_v11 = vld [vmem:[%s2730_s0 + $0x48] sm:$0xff]  ;;  %v2276_v13 = vld [vmem:[%s2730_s0 + $0xd8] sm:$0xff]  ;;  %v2286_v14 = vld [vmem:[%s2730_s0 + $0x50] sm:$0xff] }
  0x27   :  { %272 = vmatprep.mubr.f32.mxu0 %v2040_v0  ;;  %1835 = vmatpush3.bf16.msra.mxu0 %v1832_v30  ;;  %v60_v15 = vld [vmem:[%s2730_s0 + $0xe0] sm:$0xff]  ;;  %v61_v16 = vld [vmem:[%s2730_s0 + $0xe8] sm:$0xff]  ;;  %v62_v17 = vld [vmem:[%s2730_s0 + $0xf0] sm:$0xff] }
  0x28   :  { %1837 = vmatprep.subr.bf16.mxu0 %v1836_v32  ;;  %v2305_v18 = vld [vmem:[%s2730_s0 + $0x58] sm:$0xff]  ;;  %v2318_v20 = vld [vmem:[%s2730_s0 + $0x60] sm:$0xff]  ;;  %v2326_v21 = vld [vmem:[%s2730_s0 + $0x68] sm:$0xff] }
  0x29   :  { %1919 = vmatpush3.bf16.msra.mxu1 %v1844_v40  ;;  %v63_v19 = vld [vmem:[%s2730_s0 + $0xf8] sm:$0xff]  ;;  %v46_v22 = vld [vmem:[%s2730_s0 + $0x70] sm:$0xff]  ;;  %v761_v25 = vld [vmem:[%s2733_s3 + $0x68] sm:$0xff] }
  0x2a   :  { %1377 = vmatmul.mubr.msk.f32.gmra.mrb[2].mxu0 %vm105_vm0, %v2101_v35  ;;  %1849 = vmatprep.subr.bf16.mxu1 %v1848_v44  ;;  %v47_v23 = vld [vmem:[%s2730_s0 + $0x78] sm:$0xff]  ;;  %v762_v28 = vld [vmem:[%s2733_s3 + $0x70] sm:$0xff]  ;;  %v1440_v37 = vld [vmem:[%s2733_s3 + $0x80] sm:$0xff] }
  0x2b   :  { %278 = vmatprep.mubr.f32.mxu0 %v2040_v0  ;;  %1839 = vmatpush3.bf16.msra.mxu0 %v1836_v32  ;;  %v763_v29 = vld [vmem:[%s2733_s3 + $0x78] sm:$0xff]  ;;  %v2432_v32 = vld [vmem:[%s2732_s2] sm:$0x7]  ;;  %v1441_v38 = vld [vmem:[%s2733_s3 + $0x88] sm:$0xff] }
  0x2c   :  { %1841 = vmatprep.subr.bf16.mxu0 %v1840_v36  ;;  %1633 = vmatmul.mubr.msk.f32.vlgmr.msra.gmra.mrb[0].mxu1 %vm105_vm0, %v2142_v49  ;;  %v1876_v30 = vpack.c.bf16 %v763_v29, %v762_v28  ;;  %v1442_v42 = vld [vmem:[%s2733_s3 + $0x90] sm:$0xff]  ;;  %v1445_v50 = vld [vmem:[%s2733_s3 + $0xa8] sm:$0xff]  ;;  %v1447_v57 = vld [vmem:[%s2733_s3 + $0xb8] sm:$0xff] }
  0x2d   :  { %1851 = vmatpush3.bf16.msra.mxu1 %v1848_v44  ;;  %1635 = vmatprep.mubr.msk.f32.mxu1 %vm105_vm0, %v2163_v53  ;;  %v1446_v56 = vld [vmem:[%s2733_s3 + $0xb0] sm:$0xff]  ;;  %v1448_v63 = vld [vmem:[%s2733_s3 + $0xc0] sm:$0xff] }
  0x2e   :  { %1378 = vmatmul.mubr.msk.f32.gmra.mrb[4].mxu0 %vm105_vm0, %v2109_v39  ;;  %1853 = vmatprep.subr.bf16.mxu1 %v1852_v48 }
  0x2f   :  { %284 = vmatprep.mubr.f32.mxu0 %v2040_v0  ;;  %1843 = vmatpush3.bf16.msra.mxu0 %v1840_v36 }
  0x30   :  { %1845 = vmatprep.subr.bf16.mxu0 %v1844_v40  ;;  %1636 = vmatmul.mubr.msk.f32.gmra.mrb[2].mxu1 %vm105_vm0, %v2170_v55 }
  0x31   :  { %1855 = vmatpush3.bf16.msra.mxu1 %v1852_v48  ;;  %1638 = vmatprep.mubr.msk.f32.mxu1 %vm105_vm0, %v2191_v59 }
  0x32   :  { %1379 = vmatmul.mubr.msk.f32.gmra.mrb[6].mxu0 %vm105_vm0, %v2123_v43  ;;  %1857 = vmatprep.subr.bf16.mxu1 %v1856_v54 }
  0x33   :  { %290 = vmatprep.mubr.f32.mxu0 %v2040_v0  ;;  %1847 = vmatpush3.bf16.msra.mxu0 %v1844_v40 }
  0x34   :  { %1639 = vmatmul.mubr.msk.f32.gmra.mrb[4].mxu1 %vm105_vm0, %v2198_v61 }
  0x35   :  { %1859 = vmatpush3.bf16.msra.mxu1 %v1856_v54  ;;  %1641 = vmatprep.mubr.msk.f32.mxu1 %vm105_vm0, %v2219_v2 }
  0x36   :  { %1380 = vmatmul.mubr.msk.f32.gmra.mrb[8].mxu0 %vm105_vm0, %v2137_v47  ;;  %1861 = vmatprep.subr.bf16.mxu1 %v1860_v60 }
  0x37   :  { %296 = vmatprep.mubr.f32.mxu0 %v2040_v0 }
  0x38   :  { %1642 = vmatmul.mubr.msk.f32.gmra.mrb[6].mxu1 %vm105_vm0, %v2226_v4 }
  0x39   :  { %1863 = vmatpush3.bf16.msra.mxu1 %v1860_v60  ;;  %1644 = vmatprep.mubr.msk.f32.mxu1 %vm105_vm0, %v2247_v8 }
  0x3a   :  { %1381 = vmatmul.mubr.msk.f32.gmra.mrb[10].mxu0 %vm105_vm0, %v2158_v52  ;;  %1865 = vmatprep.subr.bf16.mxu1 %v1864_v3 }
  0x3b   :  { %302 = vmatprep.mubr.f32.mxu0 %v2040_v0 }
  0x3c   :  { %1645 = vmatmul.mubr.msk.f32.gmra.mrb[8].mxu1 %vm105_vm0, %v2254_v10 }
  0x3d   :  { %1867 = vmatpush3.bf16.msra.mxu1 %v1864_v3  ;;  %1647 = vmatprep.mubr.msk.f32.mxu1 %vm105_vm0, %v2269_v12 }
  0x3e   :  { %1382 = vmatmul.mubr.msk.f32.gmra.mrb[12].mxu0 %vm105_vm0, %v2186_v58  ;;  %1869 = vmatprep.subr.bf16.mxu1 %v1868_v9 }
  0x3f   :  { %308 = vmatprep.mubr.f32.mxu0 %v2040_v0 }
  0x40   :  { %1648 = vmatmul.mubr.msk.f32.gmra.mrb[10].mxu1 %vm105_vm0, %v2276_v13 }
  0x41   :  { %1871 = vmatpush3.bf16.msra.mxu1 %v1868_v9  ;;  %1650 = vmatprep.mubr.msk.f32.mxu1 %vm105_vm0, %v60_v15 }
  0x42   :  { %1383 = vmatmul.mubr.msk.f32.gmra.mrb[14].mxu0 %vm105_vm0, %v2214_v1 }
  0x43   :  { %314 = vmatprep.mubr.f32.mxu0 %v2040_v0 }
  0x44   :  { %1651 = vmatmul.mubr.msk.f32.gmra.mrb[12].mxu1 %vm105_vm0, %v61_v16 }
  0x45   :  { %1653 = vmatprep.mubr.msk.f32.mxu1 %vm105_vm0, %v62_v17 }
  0x46   :  { %1384 = vmatmul.mubr.msk.f32.gmra.mrb[16].mxu0 %vm105_vm0, %v2242_v7 }
  0x47   :  { %320 = vmatprep.mubr.f32.mxu0 %v2040_v0 }
  0x48   :  { %1654 = vmatmul.mubr.msk.f32.gmra.mrb[14].mxu1 %vm105_vm0, %v63_v19 }
  0x4a   :  { %1385 = vmatmul.mubr.msk.f32.gmra.mrb[18].mxu0 %vm105_vm0, %v2264_v11 }
  0x4b   :  { %326 = vmatprep.mubr.f32.mxu0 %v2040_v0 }
  0x4e   :  { %1386 = vmatmul.mubr.msk.f32.gmra.mrb[20].mxu0 %vm105_vm0, %v2286_v14 }
  0x4f   :  { %332 = vmatprep.mubr.f32.mxu0 %v2040_v0 }
  0x52   :  { %1387 = vmatmul.mubr.msk.f32.gmra.mrb[22].mxu0 %vm105_vm0, %v2305_v18 }
  0x53   :  { %338 = vmatprep.mubr.f32.mxu0 %v2040_v0 }
  0x56   :  { %1388 = vmatmul.mubr.msk.f32.gmra.mrb[24].mxu0 %vm105_vm0, %v2318_v20 }
  0x57   :  { %344 = vmatprep.mubr.f32.mxu0 %v2040_v0 }
  0x5a   :  { %1389 = vmatmul.mubr.msk.f32.gmra.mrb[26].mxu0 %vm105_vm0, %v2326_v21 }
  0x5b   :  { %350 = vmatprep.mubr.f32.mxu0 %v2040_v0 }
  0x5e   :  { %1390 = vmatmul.mubr.msk.f32.gmra.mrb[28].mxu0 %vm105_vm0, %v46_v22 }
  0x5f   :  { %356 = vmatprep.mubr.f32.mxu0 %v2040_v0 }
  0x62   :  { %1391 = vmatmul.mubr.msk.f32.gmra.mrb[30].mxu0 %vm105_vm0, %v47_v23 }
  0x63   :  { %362 = vmatprep.mubr.f32.mxu0 %v2040_v0 }
  0x66   :  { %1392 = vmatmul.mubr.msk.f32.gmra.mrb[32].mxu0 %vm105_vm0, %v2086_v24  ;;  %v760_v24 = vld [vmem:[%s2733_s3 + $0x60] sm:$0xff] }
  0x67   :  { %368 = vmatprep.mubr.f32.mxu0 %v2040_v0  ;;  %v1872_v27 = vpack.c.bf16 %v761_v25, %v760_v24 }
  0x69   :  { %1873 = vmatprep.subr.bf16.mxu1 %v1872_v27 }
  0x6a   :  { %1393 = vmatmul.mubr.msk.f32.gmra.mrb[34].mxu0 %vm105_vm0, %v2142_v49  ;;  %1875 = vmatpush3.bf16.msra.mxu1 %v1872_v27  ;;  %v1444_v49 = vld [vmem:[%s2733_s3 + $0xa0] sm:$0xff] }
  0x6b   :  { %374 = vmatprep.mubr.f32.mxu0 %v2040_v0  ;;  %1877 = vmatprep.subr.bf16.mxu1 %v1876_v30  ;;  %v1888_v54 = vpack.c.bf16 %v1445_v50, %v1444_v49 }
  0x6e   :  { %1394 = vmatmul.mubr.msk.f32.gmra.mrb[36].mxu0 %vm105_vm0, %v2163_v53  ;;  %1879 = vmatpush3.bf16.msra.mxu1 %v1876_v30 }
  0x6f   :  { %380 = vmatprep.mubr.f32.mxu0 %v2040_v0 }
  0x72   :  { %1395 = vmatmul.mubr.msk.f32.gmra.mrb[38].mxu0 %vm105_vm0, %v2170_v55 }
  0x73   :  { %386 = vmatprep.mubr.f32.mxu0 %v2040_v0 }
  0x76   :  { %1396 = vmatmul.mubr.msk.f32.gmra.mrb[40].mxu0 %vm105_vm0, %v2191_v59 }
  0x77   :  { %392 = vmatprep.mubr.f32.mxu0 %v2040_v0 }
  0x7a   :  { %1397 = vmatmul.mubr.msk.f32.gmra.mrb[42].mxu0 %vm105_vm0, %v2198_v61  ;;  %v1892_v61 = vpack.c.bf16 %v1447_v57, %v1446_v56 }
  0x7b   :  { %398 = vmatprep.mubr.f32.mxu0 %v2040_v0 }
  0x7e   :  { %1398 = vmatmul.mubr.msk.f32.gmra.mrb[44].mxu0 %vm105_vm0, %v2219_v2 }
  0x7f   :  { %404 = vmatprep.mubr.f32.mxu0 %v2040_v0 }
  0x82   :  { %1399 = vmatmul.mubr.msk.f32.gmra.mrb[46].mxu0 %vm105_vm0, %v2226_v4 }
  0x83   :  { %410 = vmatprep.mubr.f32.mxu0 %v2040_v0 }
  0x86   :  { %1400 = vmatmul.mubr.msk.f32.gmra.mrb[48].mxu0 %vm105_vm0, %v2247_v8  ;;  %v1451_v8 = vld [vmem:[%s2733_s3 + $0xd8] sm:$0xff] }
  0x87   :  { %416 = vmatprep.mubr.f32.mxu0 %v2040_v0 }
  0x8a   :  { %1401 = vmatmul.mubr.msk.f32.gmra.mrb[50].mxu0 %vm105_vm0, %v2254_v10 }
  0x8b   :  { %422 = vmatprep.mubr.f32.mxu0 %v2040_v0 }
  0x8e   :  { %1402 = vmatmul.mubr.msk.f32.gmra.mrb[52].mxu0 %vm105_vm0, %v2269_v12 }
  0x8f   :  { %428 = vmatprep.mubr.f32.mxu0 %v2040_v0 }
  0x92   :  { %1403 = vmatmul.mubr.msk.f32.gmra.mrb[54].mxu0 %vm105_vm0, %v2276_v13 }
  0x93   :  { %434 = vmatprep.mubr.f32.mxu0 %v2040_v0 }
  0x96   :  { %1404 = vmatmul.mubr.msk.f32.gmra.mrb[56].mxu0 %vm105_vm0, %v60_v15  ;;  %v1453_v15 = vld [vmem:[%s2733_s3 + $0xe8] sm:$0xff] }
  0x97   :  { %440 = vmatprep.mubr.f32.mxu0 %v2040_v0 }
  0x9a   :  { %1405 = vmatmul.mubr.msk.f32.gmra.mrb[58].mxu0 %vm105_vm0, %v61_v16 }
  0x9b   :  { %446 = vmatprep.mubr.f32.mxu0 %v2040_v0 }
  0x9e   :  { %1406 = vmatmul.mubr.msk.f32.gmra.mrb[60].mxu0 %vm105_vm0, %v62_v17 }
  0x9f   :  { %452 = vmatprep.mubr.f32.mxu0 %v2040_v0  ;;  %v90_v0 = vlaneseq }
  0xa2   :  { %1407 = vmatmul.mubr.msk.f32.gmra.mrb[62].mxu0 %vm105_vm0, %v63_v19 }
  0xa3   :  { %1608 = vmatprep.mubr.msk.f32.mxu0 %vm105_vm0, %v2093_v26  ;;  %v2426_v26 = vshrl.u32 %v90_v0, 7 }
  0xa5   :  { %v92_v31 = vsub.s32 0, %v2426_v26 }
  0xa6   :  { %1609 = vmatmul.mubr.msk.f32.vlgmr.msra.gmra.mrb[64].mxu0 %vm105_vm0, %v2101_v35 }
  0xa7   :  { %1611 = vmatprep.mubr.msk.f32.mxu0 %vm105_vm0, %v2109_v39  ;;  %v2435_v33 = vrot.slane %v2432_v32, %v92_v31  ;;  %v1880_v39 = vpack.c.bf16 %v1441_v38, %v1440_v37 }
  0xa9   :  { %1881 = vmatprep.subr.bf16.mxu1 %v1880_v39 }
  0xaa   :  { %1612 = vmatmul.mubr.msk.f32.gmra.mrb[66].mxu0 %vm105_vm0, %v2123_v43  ;;  %v1443_v43 = vld [vmem:[%s2733_s3 + $0x98] sm:$0xff] }
  0xab   :  { %1614 = vmatprep.mubr.msk.f32.mxu0 %vm105_vm0, %v2137_v47  ;;  %v1884_v47 = vpack.c.bf16 %v1443_v43, %v1442_v42 }
  0xae   :  { %1615 = vmatmul.mubr.msk.f32.gmra.mrb[68].mxu0 %vm105_vm0, %v2158_v52 }
  0xaf   :  { %1617 = vmatprep.mubr.msk.f32.mxu0 %vm105_vm0, %v2186_v58 }
  0xb2   :  { %1618 = vmatmul.mubr.msk.f32.gmra.mrb[70].mxu0 %vm105_vm0, %v2214_v1  ;;  %v1449_v1 = vld [vmem:[%s2733_s3 + $0xc8] sm:$0xff] }
  0xb3   :  { %1620 = vmatprep.mubr.msk.f32.mxu0 %vm105_vm0, %v2242_v7  ;;  %v1896_v5 = vpack.c.bf16 %v1449_v1, %v1448_v63  ;;  %v1450_v7 = vld [vmem:[%s2733_s3 + $0xd0] sm:$0xff] }
  0xb4   :  { %v1900_v12 = vpack.c.bf16 %v1451_v8, %v1450_v7 }
  0xb6   :  { %1621 = vmatmul.mubr.msk.f32.gmra.mrb[72].mxu0 %vm105_vm0, %v2264_v11 }
  0xb7   :  { %1623 = vmatprep.mubr.msk.f32.mxu0 %vm105_vm0, %v2286_v14  ;;  %v1452_v14 = vld [vmem:[%s2733_s3 + $0xe0] sm:$0xff] }
  0xb8   :  { %v1904_v19 = vpack.c.bf16 %v1453_v15, %v1452_v14 }
  0xba   :  { %1624 = vmatmul.mubr.msk.f32.gmra.mrb[74].mxu0 %vm105_vm0, %v2305_v18 }
  0xbb   :  { %1626 = vmatprep.mubr.msk.f32.mxu0 %vm105_vm0, %v2318_v20 }
  0xbe   :  { %1627 = vmatmul.mubr.msk.f32.gmra.mrb[76].mxu0 %vm105_vm0, %v2326_v21 }
  0xbf   :  { %1629 = vmatprep.mubr.msk.f32.mxu0 %vm105_vm0, %v46_v22 }
  0xc2   :  { %1630 = vmatmul.mubr.msk.f32.gmra.mrb[78].mxu0 %vm105_vm0, %v47_v23 }
  0xf9   :  { %v268_v34 = vpop.f32.mrb[0].mxu0 }
  0xfa   :  { %v269_v35 = vadd.f32 %v268_v34, %v2435_v33  ;;  %v2438_v36 = vpop.f32.mrb[1].mxu0 }
  0xfc   :  { %v684_v40 = vmax.f32 %v269_v35, 0.0 }
  0xfd   :  { %v274_v41 = vpop.f32.mrb[2].mxu0 }
  0xfe   :  { %716 = vst [vmem:[#allocation5] sm:$0xff] %v684_v40  ;;  %v275_v44 = vadd.f32 %v274_v41, %v2435_v33  ;;  %v2453_v45 = vpop.f32.mrb[3].mxu0  ;;  %1688 = vmatprep.mubr.f32.mxu1 %v684_v40 }
 0x100   :  { %v685_v46 = vmax.f32 %v275_v44, 0.0 }
 0x101   :  { %v280_v48 = vpop.f32.mrb[4].mxu0 }
 0x102   :  { %717 = vst [vmem:[#allocation5 + $0x18] sm:$0xff] %v685_v46  ;;  %v281_v51 = vadd.f32 %v280_v48, %v2435_v33  ;;  %v2462_v52 = vpop.f32.mrb[5].mxu0  ;;  %1689 = vmatmul.mubr.f32.vlgmr.msra.gmra.mrb[16].mxu1 %v685_v46 }
 0x103   :  { %1883 = vmatpush3.bf16.msra.mxu1 %v1880_v39 }
 0x104   :  { %v686_v53 = vmax.f32 %v281_v51, 0.0  ;;  %1885 = vmatprep.subr.bf16.mxu1 %v1884_v47 }
 0x105   :  { %v286_v55 = vpop.f32.mrb[6].mxu0 }
 0x106   :  { %718 = vst [vmem:[#allocation5 + $0x30] sm:$0xff] %v686_v53  ;;  %v287_v58 = vadd.f32 %v286_v55, %v2435_v33  ;;  %v2471_v59 = vpop.f32.mrb[7].mxu0  ;;  %1691 = vmatprep.mubr.f32.mxu1 %v686_v53 }
 0x107   :  { %1887 = vmatpush3.bf16.msra.mxu1 %v1884_v47 }
 0x108   :  { %v687_v60 = vmax.f32 %v287_v58, 0.0  ;;  %1889 = vmatprep.subr.bf16.mxu1 %v1888_v54 }
 0x109   :  { %v292_v62 = vpop.f32.mrb[8].mxu0 }
 0x10a   :  { %719 = vst [vmem:[#allocation5 + $0x48] sm:$0xff] %v687_v60  ;;  %v293_v2 = vadd.f32 %v292_v62, %v2435_v33  ;;  %v2480_v3 = vpop.f32.mrb[9].mxu0  ;;  %1692 = vmatmul.mubr.f32.gmra.mrb[18].mxu1 %v687_v60 }
 0x10b   :  { %1891 = vmatpush3.bf16.msra.mxu1 %v1888_v54 }
 0x10c   :  { %v688_v4 = vmax.f32 %v293_v2, 0.0  ;;  %1893 = vmatprep.subr.bf16.mxu1 %v1892_v61 }
 0x10d   :  { %v298_v6 = vpop.f32.mrb[10].mxu0 }
 0x10e   :  { %720 = vst [vmem:[#allocation5 + $0x60] sm:$0xff] %v688_v4  ;;  %v299_v9 = vadd.f32 %v298_v6, %v2435_v33  ;;  %v2489_v10 = vpop.f32.mrb[11].mxu0  ;;  %1694 = vmatprep.mubr.f32.mxu1 %v688_v4 }
 0x10f   :  { %1895 = vmatpush3.bf16.msra.mxu1 %v1892_v61 }
 0x110   :  { %v689_v11 = vmax.f32 %v299_v9, 0.0  ;;  %1897 = vmatprep.subr.bf16.mxu1 %v1896_v5 }
 0x111   :  { %v304_v13 = vpop.f32.mrb[12].mxu0 }
 0x112   :  { %721 = vst [vmem:[#allocation5 + $0x78] sm:$0xff] %v689_v11  ;;  %v305_v16 = vadd.f32 %v304_v13, %v2435_v33  ;;  %v2498_v17 = vpop.f32.mrb[13].mxu0  ;;  %1695 = vmatmul.mubr.f32.gmra.mrb[20].mxu1 %v689_v11 }
 0x113   :  { %1899 = vmatpush3.bf16.msra.mxu1 %v1896_v5 }
 0x114   :  { %v690_v18 = vmax.f32 %v305_v16, 0.0  ;;  %1901 = vmatprep.subr.bf16.mxu1 %v1900_v12 }
 0x115   :  { %v310_v20 = vpop.f32.mrb[14].mxu0 }
 0x116   :  { %722 = vst [vmem:[#allocation5 + $0x90] sm:$0xff] %v690_v18  ;;  %v311_v21 = vadd.f32 %v310_v20, %v2435_v33  ;;  %v2501_v22 = vpop.f32.mrb[15].mxu0  ;;  %1697 = vmatprep.mubr.f32.mxu1 %v690_v18 }
 0x117   :  { %1903 = vmatpush3.bf16.msra.mxu1 %v1900_v12 }
 0x118   :  { %v691_v23 = vmax.f32 %v311_v21, 0.0  ;;  %1905 = vmatprep.subr.bf16.mxu1 %v1904_v19 }
 0x119   :  { %v316_v24 = vpop.f32.mrb[16].mxu0 }
 0x11a   :  { %723 = vst [vmem:[#allocation5 + $0xa8] sm:$0xff] %v691_v23  ;;  %v317_v25 = vadd.f32 %v316_v24, %v2435_v33  ;;  %v2504_v27 = vpop.f32.mrb[17].mxu0  ;;  %1698 = vmatmul.mubr.f32.gmra.mrb[22].mxu1 %v691_v23 }
 0x11b   :  { %1907 = vmatpush3.bf16.msra.mxu1 %v1904_v19 }
 0x11c   :  { %v692_v28 = vmax.f32 %v317_v25, 0.0 }
 0x11d   :  { %v322_v29 = vpop.f32.mrb[18].mxu0 }
 0x11e   :  { %724 = vst [vmem:[#allocation5 + $0xc0] sm:$0xff] %v692_v28  ;;  %v323_v30 = vadd.f32 %v322_v29, %v2435_v33  ;;  %v2507_v0 = vpop.f32.mrb[19].mxu0  ;;  %1700 = vmatprep.mubr.f32.mxu1 %v692_v28 }
 0x120   :  { %v693_v31 = vmax.f32 %v323_v30, 0.0 }
 0x121   :  { %v328_v34 = vpop.f32.mrb[20].mxu0 }
 0x122   :  { %725 = vst [vmem:[#allocation5 + $0xd8] sm:$0xff] %v693_v31  ;;  %v329_v35 = vadd.f32 %v328_v34, %v2435_v33  ;;  %v2510_v37 = vpop.f32.mrb[21].mxu0  ;;  %1701 = vmatmul.mubr.f32.gmra.mrb[24].mxu1 %v693_v31 }
 0x124   :  { %v694_v38 = vmax.f32 %v329_v35, 0.0 }
 0x125   :  { %v334_v39 = vpop.f32.mrb[22].mxu0 }
 0x126   :  { %726 = vst [vmem:[#allocation5 + $0xf0] sm:$0xff] %v694_v38  ;;  %v335_v40 = vadd.f32 %v334_v39, %v2435_v33  ;;  %v2513_v41 = vpop.f32.mrb[23].mxu0  ;;  %1703 = vmatprep.mubr.f32.mxu1 %v694_v38  ;;  %v1454_v38 = vld [vmem:[%s2733_s3 + $0xf0] sm:$0xff]  ;;  %v1455_v39 = vld [vmem:[%s2733_s3 + $0xf8] sm:$0xff]  ;;  %s2041_s3 = smov [#allocation5]  }
 0x127   :  { %s1364_s29 = sshll.u32 %s2041_s3, 4  ;;  %s1365_s29 = int_to_ptr.vmem [resolvable:$true] %s1364_s29 }
 0x128   :  { %v695_v42 = vmax.f32 %v335_v40, 0.0  ;;  %s2011_s30 = scalar_lea.vmem %s1365_s29, 12288  ;;  %p2016_p9 = scmp.lt.s32.totalorder %s1365_s29, %s1365_s29 }
 0x129   :  { %v340_v43 = vpop.f32.mrb[24].mxu0  ;;  %p2012_p8 = scmp.ne.s32.totalorder %s1365_s29, %s2011_s30  ;;  %p2017_p10 = scmp.lt.s32.totalorder %s2011_s30, %s2011_s30 }
 0x12a   :  { %727 = vst [vmem:[#allocation5 + $0x108] sm:$0xff] %v695_v42  ;;  %v341_v44 = vadd.f32 %v340_v43, %v2435_v33  ;;  %v2516_v46 = vpop.f32.mrb[25].mxu0  ;;  %1704 = vmatmul.mubr.f32.gmra.mrb[26].mxu1 %v695_v42  ;;  %v1908_v43 = vpack.c.bf16 %v1455_v39, %v1454_v38  ;;  %v96_v38 = vsub.s32 1, %v2426_v26 }
 0x12b   :  { %p2018_p11 = por %p2017_p10, %p2016_p9 }
 0x12c   :  { %v696_v47 = vmax.f32 %v341_v44, 0.0  ;;  %1909 = vmatprep.subr.bf16.mxu1 %v1908_v43  ;;  %v2583_v39 = vrot.slane %v2432_v32, %v96_v38 }
 0x12d   :  { %v346_v48 = vpop.f32.mrb[26].mxu0  ;;  %1911 = vmatpush3.bf16.msra.mxu1 %v1908_v43  ;;  %p2019_p12 = pnand %p2018_p11, %p2012_p8 }
 0x12e   :  { %728 = vst [vmem:[#allocation5 + $0x120] sm:$0xff] %v696_v47  ;;  %v347_v49 = vadd.f32 %v346_v48, %v2435_v33  ;;  %v2519_v50 = vpop.f32.mrb[27].mxu0  ;;  %1706 = vmatprep.mubr.f32.mxu1 %v696_v47  ;;  %v325_v38 = vadd.f32 %v2507_v0, %v2583_v39  ;;  %v331_v0 = vadd.f32 %v2510_v37, %v2583_v39 }
 0x130   :  { %v697_v51 = vmax.f32 %v347_v49, 0.0 }
 0x131   :  { %v352_v53 = vpop.f32.mrb[28].mxu0 }
 0x132   :  { %729 = vst [vmem:[#allocation5 + $0x138] sm:$0xff] %v697_v51  ;;  %v353_v54 = vadd.f32 %v352_v53, %v2435_v33  ;;  %v2522_v55 = vpop.f32.mrb[29].mxu0  ;;  %1707 = vmatmul.mubr.f32.gmra.mrb[28].mxu1 %v697_v51 }
 0x134   :  { %v698_v56 = vmax.f32 %v353_v54, 0.0 }
 0x135   :  { %v358_v57 = vpop.f32.mrb[30].mxu0 }
 0x136   :  { %730 = vst [vmem:[#allocation5 + $0x150] sm:$0xff] %v698_v56  ;;  %v359_v58 = vadd.f32 %v358_v57, %v2435_v33  ;;  %v2525_v60 = vpop.f32.mrb[31].mxu0  ;;  %1709 = vmatprep.mubr.f32.mxu1 %v698_v56 }
 0x138   :  { %v699_v61 = vmax.f32 %v359_v58, 0.0 }
 0x139   :  { %v364_v62 = vpop.f32.mrb[32].mxu0 }
 0x13a   :  { %731 = vst [vmem:[#allocation5 + $0x168] sm:$0xff] %v699_v61  ;;  %v365_v63 = vadd.f32 %v364_v62, %v2435_v33  ;;  %v2528_v1 = vpop.f32.mrb[33].mxu0  ;;  %1710 = vmatmul.mubr.f32.gmra.mrb[30].mxu1 %v699_v61 }
 0x13c   :  { %v700_v2 = vmax.f32 %v365_v63, 0.0 }
 0x13d   :  { %v370_v4 = vpop.f32.mrb[34].mxu0 }
 0x13e   :  { %732 = vst [vmem:[#allocation5 + $0x180] sm:$0xff] %v700_v2  ;;  %v371_v5 = vadd.f32 %v370_v4, %v2435_v33  ;;  %v2531_v6 = vpop.f32.mrb[35].mxu0  ;;  %1712 = vmatprep.mubr.f32.mxu1 %v700_v2 }
 0x140   :  { %v701_v7 = vmax.f32 %v371_v5, 0.0 }
 0x141   :  { %v376_v8 = vpop.f32.mrb[36].mxu0 }
 0x142   :  { %733 = vst [vmem:[#allocation5 + $0x198] sm:$0xff] %v701_v7  ;;  %v377_v9 = vadd.f32 %v376_v8, %v2435_v33  ;;  %v2534_v11 = vpop.f32.mrb[37].mxu0  ;;  %1713 = vmatmul.mubr.f32.gmra.mrb[32].mxu1 %v701_v7 }
 0x144   :  { %v702_v12 = vmax.f32 %v377_v9, 0.0 }
 0x145   :  { %v382_v13 = vpop.f32.mrb[38].mxu0 }
 0x146   :  { %734 = vst [vmem:[#allocation5 + $0x1b0] sm:$0xff] %v702_v12  ;;  %v383_v14 = vadd.f32 %v382_v13, %v2435_v33  ;;  %v2537_v15 = vpop.f32.mrb[39].mxu0  ;;  %1715 = vmatprep.mubr.f32.mxu1 %v702_v12 }
 0x148   :  { %v703_v16 = vmax.f32 %v383_v14, 0.0 }
 0x149   :  { %v388_v18 = vpop.f32.mrb[40].mxu0 }
 0x14a   :  { %735 = vst [vmem:[#allocation5 + $0x1c8] sm:$0xff] %v703_v16  ;;  %v389_v19 = vadd.f32 %v388_v18, %v2435_v33  ;;  %v2540_v20 = vpop.f32.mrb[41].mxu0  ;;  %1716 = vmatmul.mubr.f32.gmra.mrb[34].mxu1 %v703_v16 }
 0x14c   :  { %v704_v21 = vmax.f32 %v389_v19, 0.0 }
 0x14d   :  { %v394_v23 = vpop.f32.mrb[42].mxu0 }
 0x14e   :  { %736 = vst [vmem:[#allocation5 + $0x1e0] sm:$0xff] %v704_v21  ;;  %v395_v24 = vadd.f32 %v394_v23, %v2435_v33  ;;  %v2543_v25 = vpop.f32.mrb[43].mxu0  ;;  %1718 = vmatprep.mubr.f32.mxu1 %v704_v21 }
 0x150   :  { %v705_v28 = vmax.f32 %v395_v24, 0.0 }
 0x151   :  { %v400_v29 = vpop.f32.mrb[44].mxu0 }
 0x152   :  { %737 = vst [vmem:[#allocation5 + $0x1f8] sm:$0xff] %v705_v28  ;;  %v401_v30 = vadd.f32 %v400_v29, %v2435_v33  ;;  %v2546_v31 = vpop.f32.mrb[45].mxu0  ;;  %1719 = vmatmul.mubr.f32.gmra.mrb[36].mxu1 %v705_v28 }
 0x154   :  { %v706_v34 = vmax.f32 %v401_v30, 0.0 }
 0x155   :  { %v406_v35 = vpop.f32.mrb[46].mxu0 }
 0x156   :  { %738 = vst [vmem:[#allocation5 + $0x210] sm:$0xff] %v706_v34  ;;  %v407_v40 = vadd.f32 %v406_v35, %v2435_v33  ;;  %v2555_v42 = vpop.f32.mrb[47].mxu0  ;;  %1721 = vmatprep.mubr.f32.mxu1 %v706_v34 }
 0x158   :  { %v707_v44 = vmax.f32 %v407_v40, 0.0  ;;  %v277_v40 = vadd.f32 %v2453_v45, %v2583_v39  ;;  %v283_v45 = vadd.f32 %v2462_v52, %v2583_v39 }
 0x159   :  { %v412_v47 = vpop.f32.mrb[48].mxu0 }
 0x15a   :  { %739 = vst [vmem:[#allocation5 + $0x228] sm:$0xff] %v707_v44  ;;  %v413_v48 = vadd.f32 %v412_v47, %v2435_v33  ;;  %v2558_v49 = vpop.f32.mrb[49].mxu0  ;;  %1722 = vmatmul.mubr.f32.gmra.mrb[38].mxu1 %v707_v44  ;;  %v271_v44 = vadd.f32 %v2438_v36, %v2583_v39 }
 0x15c   :  { %v708_v51 = vmax.f32 %v413_v48, 0.0 }
 0x15d   :  { %v418_v53 = vpop.f32.mrb[50].mxu0 }
 0x15e   :  { %740 = vst [vmem:[#allocation5 + $0x240] sm:$0xff] %v708_v51  ;;  %v419_v54 = vadd.f32 %v418_v53, %v2435_v33  ;;  %v2561_v56 = vpop.f32.mrb[51].mxu0  ;;  %1724 = vmatprep.mubr.f32.mxu1 %v708_v51 }
 0x160   :  { %v709_v57 = vmax.f32 %v419_v54, 0.0 }
 0x161   :  { %v424_v58 = vpop.f32.mrb[52].mxu0 }
 0x162   :  { %741 = vst [vmem:[#allocation5 + $0x258] sm:$0xff] %v709_v57  ;;  %v425_v61 = vadd.f32 %v424_v58, %v2435_v33  ;;  %v2564_v62 = vpop.f32.mrb[53].mxu0  ;;  %1725 = vmatmul.mubr.f32.gmra.mrb[40].mxu1 %v709_v57  ;;  %v289_v58 = vadd.f32 %v2471_v59, %v2583_v39  ;;  %v295_v59 = vadd.f32 %v2480_v3, %v2583_v39 }
 0x164   :  { %v710_v63 = vmax.f32 %v425_v61, 0.0 }
 0x165   :  { %v430_v2 = vpop.f32.mrb[54].mxu0 }
 0x166   :  { %742 = vst [vmem:[#allocation5 + $0x270] sm:$0xff] %v710_v63  ;;  %v431_v4 = vadd.f32 %v430_v2, %v2435_v33  ;;  %v2567_v5 = vpop.f32.mrb[55].mxu0  ;;  %1727 = vmatprep.mubr.f32.mxu1 %v710_v63 }
 0x168   :  { %v711_v7 = vmax.f32 %v431_v4, 0.0 }
 0x169   :  { %v436_v8 = vpop.f32.mrb[56].mxu0 }
 0x16a   :  { %743 = vst [vmem:[#allocation5 + $0x288] sm:$0xff] %v711_v7  ;;  %v437_v9 = vadd.f32 %v436_v8, %v2435_v33  ;;  %v2570_v12 = vpop.f32.mrb[57].mxu0  ;;  %1728 = vmatmul.mubr.f32.gmra.mrb[42].mxu1 %v711_v7  ;;  %v301_v8 = vadd.f32 %v2489_v10, %v2583_v39  ;;  %v307_v10 = vadd.f32 %v2498_v17, %v2583_v39 }
 0x16c   :  { %v712_v13 = vmax.f32 %v437_v9, 0.0 }
 0x16d   :  { %v442_v14 = vpop.f32.mrb[58].mxu0 }
 0x16e   :  { %744 = vst [vmem:[#allocation5 + $0x2a0] sm:$0xff] %v712_v13  ;;  %v443_v16 = vadd.f32 %v442_v14, %v2435_v33  ;;  %v2573_v18 = vpop.f32.mrb[59].mxu0  ;;  %1730 = vmatprep.mubr.f32.mxu1 %v712_v13 }
 0x170   :  { %v713_v19 = vmax.f32 %v443_v16, 0.0 }
 0x171   :  { %v448_v21 = vpop.f32.mrb[60].mxu0 }
 0x172   :  { %745 = vst [vmem:[#allocation5 + $0x2b8] sm:$0xff] %v713_v19  ;;  %v449_v23 = vadd.f32 %v448_v21, %v2435_v33  ;;  %v2576_v24 = vpop.f32.mrb[61].mxu0  ;;  %1731 = vmatmul.mubr.f32.gmra.mrb[44].mxu1 %v713_v19  ;;  %v313_v21 = vadd.f32 %v2501_v22, %v2583_v39  ;;  %v319_v22 = vadd.f32 %v2504_v27, %v2583_v39 }
 0x174   :  { %v714_v28 = vmax.f32 %v449_v23, 0.0 }
 0x175   :  { %v454_v29 = vpop.f32.mrb[62].mxu0 }
 0x176   :  { %746 = vst [vmem:[#allocation5 + $0x2d0] sm:$0xff] %v714_v28  ;;  %v455_v30 = vadd.f32 %v454_v29, %v2435_v33  ;;  %v2579_v34 = vpop.f32.mrb[63].mxu0  ;;  %1733 = vmatprep.mubr.f32.mxu1 %v714_v28 }
 0x178   :  { %v715_v35 = vmax.f32 %v455_v30, 0.0 }
 0x179   :  { %v2587_v43 = vpop.f32.mrb[64].mxu0 }
 0x17a   :  { %747 = vst [vmem:[#allocation5 + $0x2e8] sm:$0xff] %v715_v35  ;;  %1734 = vmatmul.mubr.f32.gmra.mrb[46].mxu1 %v715_v35  ;;  %v2591_v47 = vpop.f32.mrb[65].mxu0 }
 0x1d5   :  { %v1690_v33 = vpop.f32.mrb[16].mxu1 }
 0x1d6   :  { %v836_v48 = vadd.f32 %v1690_v33, %v277_v40  ;;  %v830_v51 = vpop.f32.mrb[17].mxu1 }
 0x1d7   :  { %v831_v53 = vadd.f32 %v830_v51, %v271_v44 }
 0x1d8   :  { %v990_v54 = vmax.f32 %v836_v48, 0.0 }
 0x1d9   :  { %v989_v57 = vmax.f32 %v831_v53, 0.0  ;;  %v337_v53 = vadd.f32 %v2513_v41, %v2583_v39  ;;  %v343_v41 = vadd.f32 %v2516_v46, %v2583_v39 }
 0x1da   :  { %1022 = vst [vmem:[#allocation5 + $0x20] sm:$0xff] %v990_v54 }
 0x1db   :  { %1021 = vst [vmem:[#allocation5 + $0x8] sm:$0xff] %v989_v57  ;;  %1768 = vmatprep.mubr.f32.mxu1 %v989_v57 }
 0x1dc   :  { %1769 = vmatmul.mubr.f32.vlgmr.msra.gmra.mrb[48].mxu1 %v990_v54 }
 0x1dd   :  { %v1693_v61 = vpop.f32.mrb[18].mxu1 }
 0x1de   :  { %v846_v36 = vadd.f32 %v1693_v61, %v289_v58  ;;  %v840_v63 = vpop.f32.mrb[19].mxu1 }
 0x1df   :  { %v841_v2 = vadd.f32 %v840_v63, %v283_v45 }
 0x1e0   :  { %v992_v4 = vmax.f32 %v846_v36, 0.0  ;;  %v349_v36 = vadd.f32 %v2519_v50, %v2583_v39  ;;  %v355_v50 = vadd.f32 %v2522_v55, %v2583_v39 }
 0x1e1   :  { %v991_v7 = vmax.f32 %v841_v2, 0.0 }
 0x1e2   :  { %1024 = vst [vmem:[#allocation5 + $0x50] sm:$0xff] %v992_v4 }
 0x1e3   :  { %1023 = vst [vmem:[#allocation5 + $0x38] sm:$0xff] %v991_v7  ;;  %1771 = vmatprep.mubr.f32.mxu1 %v991_v7 }
 0x1e4   :  { %1772 = vmatmul.mubr.f32.gmra.mrb[50].mxu1 %v992_v4 }
 0x1e5   :  { %v1696_v9 = vpop.f32.mrb[20].mxu1 }
 0x1e6   :  { %v856_v13 = vadd.f32 %v1696_v9, %v301_v8  ;;  %v850_v14 = vpop.f32.mrb[21].mxu1 }
 0x1e7   :  { %v851_v52 = vadd.f32 %v850_v14, %v295_v59  ;;  %v361_v59 = vadd.f32 %v2525_v60, %v2583_v39  ;;  %v367_v60 = vadd.f32 %v2528_v1, %v2583_v39 }
 0x1e8   :  { %v994_v16 = vmax.f32 %v856_v13, 0.0 }
 0x1e9   :  { %v993_v19 = vmax.f32 %v851_v52, 0.0 }
 0x1ea   :  { %1026 = vst [vmem:[#allocation5 + $0x80] sm:$0xff] %v994_v16 }
 0x1eb   :  { %1025 = vst [vmem:[#allocation5 + $0x68] sm:$0xff] %v993_v19  ;;  %1774 = vmatprep.mubr.f32.mxu1 %v993_v19  ;;  %v373_v19 = vadd.f32 %v2531_v6, %v2583_v39  ;;  %v379_v6 = vadd.f32 %v2534_v11, %v2583_v39 }
 0x1ec   :  { %1775 = vmatmul.mubr.f32.gmra.mrb[52].mxu1 %v994_v16 }
 0x1ed   :  { %v1699_v23 = vpop.f32.mrb[22].mxu1 }
 0x1ee   :  { %v866_v28 = vadd.f32 %v1699_v23, %v313_v21  ;;  %v860_v29 = vpop.f32.mrb[23].mxu1 }
 0x1ef   :  { %v861_v3 = vadd.f32 %v860_v29, %v307_v10 }
 0x1f0   :  { %v996_v30 = vmax.f32 %v866_v28, 0.0 }
 0x1f1   :  { %v995_v35 = vmax.f32 %v861_v3, 0.0  ;;  %v385_v3 = vadd.f32 %v2537_v15, %v2583_v39  ;;  %v391_v15 = vadd.f32 %v2540_v20, %v2583_v39 }
 0x1f2   :  { %1028 = vst [vmem:[#allocation5 + $0xb0] sm:$0xff] %v996_v30 }
 0x1f3   :  { %1027 = vst [vmem:[#allocation5 + $0x98] sm:$0xff] %v995_v35  ;;  %1777 = vmatprep.mubr.f32.mxu1 %v995_v35 }
 0x1f4   :  { %1778 = vmatmul.mubr.f32.gmra.mrb[54].mxu1 %v996_v30 }
 0x1f5   :  { %v1702_v40 = vpop.f32.mrb[24].mxu1 }
 0x1f6   :  { %v876_v44 = vadd.f32 %v1702_v40, %v325_v38  ;;  %v870_v33 = vpop.f32.mrb[25].mxu1 }
 0x1f7   :  { %v871_v17 = vadd.f32 %v870_v33, %v319_v22 }
 0x1f8   :  { %v998_v48 = vmax.f32 %v876_v44, 0.0  ;;  %v397_v44 = vadd.f32 %v2543_v25, %v2583_v39  ;;  %v403_v25 = vadd.f32 %v2546_v31, %v2583_v39 }
 0x1f9   :  { %v997_v51 = vmax.f32 %v871_v17, 0.0 }
 0x1fa   :  { %1030 = vst [vmem:[#allocation5 + $0xe0] sm:$0xff] %v998_v48 }
 0x1fb   :  { %1029 = vst [vmem:[#allocation5 + $0xc8] sm:$0xff] %v997_v51  ;;  %1780 = vmatprep.mubr.f32.mxu1 %v997_v51 }
 0x1fc   :  { %1781 = vmatmul.mubr.f32.gmra.mrb[56].mxu1 %v998_v48 }
 0x1fd   :  { %v1705_v54 = vpop.f32.mrb[26].mxu1 }
 0x1fe   :  { %v886_v57 = vadd.f32 %v1705_v54, %v337_v53  ;;  %v880_v58 = vpop.f32.mrb[27].mxu1 }
 0x1ff   :  { %v881_v27 = vadd.f32 %v880_v58, %v331_v0  ;;  %v409_v0 = vadd.f32 %v2555_v42, %v2583_v39  ;;  %v415_v42 = vadd.f32 %v2558_v49, %v2583_v39  ;;  %v427_v49 = vadd.f32 %v2564_v62, %v2583_v39 }
 0x200   :  { %v1000_v45 = vmax.f32 %v886_v57, 0.0  ;;  %v439_v62 = vadd.f32 %v2570_v12, %v2583_v39 }
 0x201   :  { %v999_v61 = vmax.f32 %v881_v27, 0.0 }
 0x202   :  { %1032 = vst [vmem:[#allocation5 + $0x110] sm:$0xff] %v1000_v45 }
 0x203   :  { %1031 = vst [vmem:[#allocation5 + $0xf8] sm:$0xff] %v999_v61  ;;  %1783 = vmatprep.mubr.f32.mxu1 %v999_v61  ;;  %v421_v61 = vadd.f32 %v2561_v56, %v2583_v39  ;;  %v433_v56 = vadd.f32 %v2567_v5, %v2583_v39  ;;  %v445_v5 = vadd.f32 %v2573_v18, %v2583_v39 }
 0x204   :  { %1784 = vmatmul.mubr.f32.gmra.mrb[58].mxu1 %v1000_v45  ;;  %v451_v18 = vadd.f32 %v2576_v24, %v2583_v39 }
 0x205   :  { %v1708_v63 = vpop.f32.mrb[28].mxu1 }
 0x206   :  { %v896_v2 = vadd.f32 %v1708_v63, %v349_v36  ;;  %v890_v4 = vpop.f32.mrb[29].mxu1 }
 0x207   :  { %v891_v37 = vadd.f32 %v890_v4, %v343_v41  ;;  %v2641_v41 = vpop.f32.mrb[66].mxu0 }
 0x208   :  { %v1002_v7 = vmax.f32 %v896_v2, 0.0  ;;  %v2643_v2 = vpop.f32.mrb[67].mxu0 }
 0x209   :  { %v1001_v8 = vmax.f32 %v891_v37, 0.0 }
 0x20a   :  { %1034 = vst [vmem:[#allocation5 + $0x140] sm:$0xff] %v1002_v7 }
 0x20b   :  { %1033 = vst [vmem:[#allocation5 + $0x128] sm:$0xff] %v1001_v8  ;;  %1786 = vmatprep.mubr.f32.mxu1 %v1001_v8 }
 0x20c   :  { %1787 = vmatmul.mubr.f32.gmra.mrb[60].mxu1 %v1002_v7 }
 0x20d   :  { %v1711_v9 = vpop.f32.mrb[30].mxu1 }
 0x20e   :  { %v906_v13 = vadd.f32 %v1711_v9, %v361_v59  ;;  %v900_v14 = vpop.f32.mrb[31].mxu1  ;;  %v2649_v59 = vpop.f32.mrb[68].mxu0 }
 0x20f   :  { %v901_v46 = vadd.f32 %v900_v14, %v355_v50 }
 0x210   :  { %v1004_v52 = vmax.f32 %v906_v13, 0.0  ;;  %v2651_v13 = vpop.f32.mrb[69].mxu0 }
 0x211   :  { %v1003_v16 = vmax.f32 %v901_v46, 0.0 }
 0x212   :  { %1036 = vst [vmem:[#allocation5 + $0x170] sm:$0xff] %v1004_v52 }
 0x213   :  { %1035 = vst [vmem:[#allocation5 + $0x158] sm:$0xff] %v1003_v16  ;;  %1789 = vmatprep.mubr.f32.mxu1 %v1003_v16 }
 0x214   :  { %1790 = vmatmul.mubr.f32.gmra.mrb[62].mxu1 %v1004_v52 }
 0x215   :  { %v1714_v21 = vpop.f32.mrb[32].mxu1 }
 0x216   :  { %v916_v10 = vadd.f32 %v1714_v21, %v373_v19  ;;  %v910_v23 = vpop.f32.mrb[33].mxu1  ;;  %v1619_v19 = vpop.f32.mrb[70].mxu0 }
 0x217   :  { %v911_v55 = vadd.f32 %v910_v23, %v367_v60 }
 0x218   :  { %v1006_v28 = vmax.f32 %v916_v10, 0.0  ;;  %v555_v10 = vpop.f32.mrb[71].mxu0 }
 0x219   :  { %v1005_v29 = vmax.f32 %v911_v55, 0.0  ;;  %v1622_v12 = vpop.f32.mrb[72].mxu0 }
 0x21a   :  { %1038 = vst [vmem:[#allocation5 + $0x1a0] sm:$0xff] %v1006_v28 }
 0x21b   :  { %1037 = vst [vmem:[#allocation5 + $0x188] sm:$0xff] %v1005_v29  ;;  %1792 = vmatprep.mubr.f32.mxu1 %v1005_v29  ;;  %v457_v29 = vadd.f32 %v2579_v34, %v2583_v39  ;;  %v100_v39 = vsub.s32 2, %v2426_v26 }
 0x21c   :  { %1793 = vmatmul.mubr.f32.gmra.mrb[0].mxu1 %v1006_v28 }
 0x21d   :  { %v1717_v30 = vpop.f32.mrb[34].mxu1 }
 0x21e   :  { %v926_v35 = vadd.f32 %v1717_v30, %v385_v3  ;;  %v920_v38 = vpop.f32.mrb[35].mxu1 }
 0x21f   :  { %v921_v1 = vadd.f32 %v920_v38, %v379_v6 }
 0x220   :  { %v1008_v22 = vmax.f32 %v926_v35, 0.0  ;;  %v565_v35 = vpop.f32.mrb[73].mxu0 }
 0x221   :  { %v1007_v40 = vmax.f32 %v921_v1, 0.0 }
 0x222   :  { %1040 = vst [vmem:[#allocation5 + $0x1d0] sm:$0xff] %v1008_v22 }
 0x223   :  { %1039 = vst [vmem:[#allocation5 + $0x1b8] sm:$0xff] %v1007_v40  ;;  %1795 = vmatprep.mubr.f32.mxu1 %v1007_v40  ;;  %v1625_v40 = vpop.f32.mrb[74].mxu0 }
 0x224   :  { %1796 = vmatmul.mubr.f32.gmra.mrb[2].mxu1 %v1008_v22 }
 0x225   :  { %v1720_v33 = vpop.f32.mrb[36].mxu1 }
 0x226   :  { %v936_v17 = vadd.f32 %v1720_v33, %v397_v44  ;;  %v930_v48 = vpop.f32.mrb[37].mxu1  ;;  %v575_v44 = vpop.f32.mrb[75].mxu0 }
 0x227   :  { %v931_v11 = vadd.f32 %v930_v48, %v391_v15  ;;  %v2661_v15 = vpop.f32.mrb[76].mxu0 }
 0x228   :  { %v1010_v51 = vmax.f32 %v936_v17, 0.0  ;;  %v2663_v34 = vpop.f32.mrb[77].mxu0  ;;  %v2671_v17 = vrot.slane %v2432_v32, %v100_v39 }
 0x229   :  { %v1009_v53 = vmax.f32 %v931_v11, 0.0  ;;  %v2665_v33 = vpop.f32.mrb[78].mxu0 }
 0x22a   :  { %1042 = vst [vmem:[#allocation5 + $0x200] sm:$0xff] %v1010_v51  ;;  %v2667_v24 = vpop.f32.mrb[79].mxu0  ;;  %v531_v48 = vadd.f32 %v2587_v43, %v2671_v17  ;;  %v526_v11 = vadd.f32 %v2591_v47, %v2671_v17  ;;  %v536_v26 = vadd.f32 %v2643_v2, %v2671_v17 }
 0x22b   :  { %1041 = vst [vmem:[#allocation5 + $0x1e8] sm:$0xff] %v1009_v53  ;;  %1798 = vmatprep.mubr.f32.mxu1 %v1009_v53 }
 0x22c   :  { %1799 = vmatmul.mubr.f32.gmra.mrb[4].mxu1 %v1010_v51 }
 0x22d   :  { %v1723_v54 = vpop.f32.mrb[38].mxu1 }
 0x22e   :  { %v946_v57 = vadd.f32 %v1723_v54, %v409_v0  ;;  %v940_v58 = vpop.f32.mrb[39].mxu1 }
 0x22f   :  { %v941_v20 = vadd.f32 %v940_v58, %v403_v25  ;;  %v541_v58 = vadd.f32 %v2641_v41, %v2671_v17 }
 0x230   :  { %v1012_v27 = vmax.f32 %v946_v57, 0.0 }
 0x231   :  { %v1011_v45 = vmax.f32 %v941_v20, 0.0 }
 0x232   :  { %1044 = vst [vmem:[#allocation5 + $0x230] sm:$0xff] %v1012_v27 }
 0x233   :  { %1043 = vst [vmem:[#allocation5 + $0x218] sm:$0xff] %v1011_v45  ;;  %1801 = vmatprep.mubr.f32.mxu1 %v1011_v45 }
 0x234   :  { %1802 = vmatmul.mubr.f32.gmra.mrb[6].mxu1 %v1012_v27 }
 0x235   :  { %v1726_v36 = vpop.f32.mrb[40].mxu1 }
 0x236   :  { %v956_v31 = vadd.f32 %v1726_v36, %v421_v61  ;;  %v950_v63 = vpop.f32.mrb[41].mxu1  ;;  %v551_v61 = vadd.f32 %v2649_v59, %v2671_v17 }
 0x237   :  { %v951_v4 = vadd.f32 %v950_v63, %v415_v42  ;;  %v546_v42 = vadd.f32 %v2651_v13, %v2671_v17  ;;  %v571_v13 = vadd.f32 %v1622_v12, %v2671_v17  ;;  %v586_v12 = vadd.f32 %v2663_v34, %v2671_v17 }
 0x238   :  { %v1014_v37 = vmax.f32 %v956_v31, 0.0 }
 0x239   :  { %v1013_v7 = vmax.f32 %v951_v4, 0.0 }
 0x23a   :  { %1046 = vst [vmem:[#allocation5 + $0x260] sm:$0xff] %v1014_v37 }
 0x23b   :  { %1045 = vst [vmem:[#allocation5 + $0x248] sm:$0xff] %v1013_v7  ;;  %1804 = vmatprep.mubr.f32.mxu1 %v1013_v7  ;;  %v556_v7 = vadd.f32 %v555_v10, %v2671_v17 }
 0x23c   :  { %1805 = vmatmul.mubr.f32.gmra.mrb[8].mxu1 %v1014_v37  ;;  %v561_v37 = vadd.f32 %v1619_v19, %v2671_v17 }
 0x23d   :  { %v1729_v8 = vpop.f32.mrb[42].mxu1 }
 0x23e   :  { %v966_v50 = vadd.f32 %v1729_v8, %v433_v56  ;;  %v960_v9 = vpop.f32.mrb[43].mxu1 }
 0x23f   :  { %v961_v14 = vadd.f32 %v960_v9, %v427_v49 }
 0x240   :  { %v1016_v46 = vmax.f32 %v966_v50, 0.0 }
 0x241   :  { %v1015_v52 = vmax.f32 %v961_v14, 0.0  ;;  %v566_v14 = vadd.f32 %v565_v35, %v2671_v17 }
 0x242   :  { %1048 = vst [vmem:[#allocation5 + $0x290] sm:$0xff] %v1016_v46 }
 0x243   :  { %1047 = vst [vmem:[#allocation5 + $0x278] sm:$0xff] %v1015_v52  ;;  %1807 = vmatprep.mubr.f32.mxu1 %v1015_v52 }
 0x244   :  { %1808 = vmatmul.mubr.f32.gmra.mrb[10].mxu1 %v1016_v46 }
 0x245   :  { %v1732_v16 = vpop.f32.mrb[44].mxu1 }
 0x246   :  { %v976_v60 = vadd.f32 %v1732_v16, %v445_v5  ;;  %v970_v21 = vpop.f32.mrb[45].mxu1 }
 0x247   :  { %v971_v23 = vadd.f32 %v970_v21, %v439_v62  ;;  %v576_v21 = vadd.f32 %v575_v44, %v2671_v17  ;;  %v596_v44 = vadd.f32 %v2667_v24, %v2671_v17 }
 0x248   :  { %v1018_v55 = vmax.f32 %v976_v60, 0.0  ;;  %v581_v60 = vadd.f32 %v1625_v40, %v2671_v17  ;;  %v601_v40 = vadd.f32 %v2665_v33, %v2671_v17 }
 0x249   :  { %v1017_v28 = vmax.f32 %v971_v23, 0.0 }
 0x24a   :  { %1050 = vst [vmem:[#allocation5 + $0x2c0] sm:$0xff] %v1018_v55 }
 0x24b   :  { %1049 = vst [vmem:[#allocation5 + $0x2a8] sm:$0xff] %v1017_v28  ;;  %1810 = vmatprep.mubr.f32.mxu1 %v1017_v28 }
 0x24c   :  { %1811 = vmatmul.mubr.f32.gmra.mrb[12].mxu1 %v1018_v55 }
 0x24d   :  { %v1735_v3 = vpop.f32.mrb[46].mxu1 }
 0x24e   :  { %v986_v6 = vadd.f32 %v1735_v3, %v457_v29  ;;  %v980_v30 = vpop.f32.mrb[47].mxu1  ;;  %v591_v3 = vadd.f32 %v2661_v15, %v2671_v17 }
 0x24f   :  { %v981_v38 = vadd.f32 %v980_v30, %v451_v18 }
 0x250   :  { %v1020_v1 = vmax.f32 %v986_v6, 0.0 }
 0x251   :  { %v1019_v22 = vmax.f32 %v981_v38, 0.0 }
 0x252   :  { %1052 = vst [vmem:[#allocation5 + $0x2f0] sm:$0xff] %v1020_v1 }
 0x253   :  { %1051 = vst [vmem:[#allocation5 + $0x2d8] sm:$0xff] %v1019_v22  ;;  %1813 = vmatprep.mubr.f32.mxu1 %v1019_v22 }
 0x254   :  { %1814 = vmatmul.mubr.f32.gmra.mrb[14].mxu1 %v1020_v1 }
 0x2af   :  { %v1770_v51 = vpop.f32.mrb[48].mxu1 }
 0x2b0   :  { %v1142_v53 = vadd.f32 %v1770_v51, %v531_v48  ;;  %v1136_v0 = vpop.f32.mrb[49].mxu1 }
 0x2b1   :  { %v1137_v25 = vadd.f32 %v1136_v0, %v526_v11 }
 0x2b2   :  { %v1296_v54 = vmax.f32 %v1142_v53, 0.0 }
 0x2b3   :  { %v1295_v57 = vmax.f32 %v1137_v25, 0.0 }
 0x2b4   :  { %1328 = vst [vmem:[#allocation5 + $0x28] sm:$0xff] %v1296_v54 }
 0x2b5   :  { %1327 = vst [vmem:[#allocation5 + $0x10] sm:$0xff] %v1295_v57 }
 0x2b7   :  { %v1773_v32 = vpop.f32.mrb[50].mxu1 }
 0x2b8   :  { %v1152_v20 = vadd.f32 %v1773_v32, %v541_v58  ;;  %v1146_v43 = vpop.f32.mrb[51].mxu1 }
 0x2b9   :  { %v1147_v27 = vadd.f32 %v1146_v43, %v536_v26 }
 0x2ba   :  { %v1298_v45 = vmax.f32 %v1152_v20, 0.0 }
 0x2bb   :  { %v1297_v47 = vmax.f32 %v1147_v27, 0.0 }
 0x2bc   :  { %1330 = vst [vmem:[#allocation5 + $0x58] sm:$0xff] %v1298_v45 }
 0x2bd   :  { %1329 = vst [vmem:[#allocation5 + $0x40] sm:$0xff] %v1297_v47 }
 0x2bf   :  { %v1776_v36 = vpop.f32.mrb[52].mxu1 }
 0x2c0   :  { %v1162_v41 = vadd.f32 %v1776_v36, %v551_v61  ;;  %v1156_v31 = vpop.f32.mrb[53].mxu1 }
 0x2c1   :  { %v1157_v63 = vadd.f32 %v1156_v31, %v546_v42 }
 0x2c2   :  { %v1300_v4 = vmax.f32 %v1162_v41, 0.0 }
 0x2c3   :  { %v1299_v2 = vmax.f32 %v1157_v63, 0.0 }
 0x2c4   :  { %1332 = vst [vmem:[#allocation5 + $0x88] sm:$0xff] %v1300_v4 }
 0x2c5   :  { %1331 = vst [vmem:[#allocation5 + $0x70] sm:$0xff] %v1299_v2 }
 0x2c7   :  { %v1779_v56 = vpop.f32.mrb[54].mxu1 }
 0x2c8   :  { %v1172_v49 = vadd.f32 %v1779_v56, %v561_v37  ;;  %v1166_v8 = vpop.f32.mrb[55].mxu1 }
 0x2c9   :  { %v1167_v59 = vadd.f32 %v1166_v8, %v556_v7 }
 0x2ca   :  { %v1302_v50 = vmax.f32 %v1172_v49, 0.0 }
 0x2cb   :  { %v1301_v9 = vmax.f32 %v1167_v59, 0.0 }
 0x2cc   :  { %1334 = vst [vmem:[#allocation5 + $0xb8] sm:$0xff] %v1302_v50 }
 0x2cd   :  { %1333 = vst [vmem:[#allocation5 + $0xa0] sm:$0xff] %v1301_v9 }
 0x2cf   :  { %v1782_v46 = vpop.f32.mrb[56].mxu1 }
 0x2d0   :  { %v1182_v52 = vadd.f32 %v1782_v46, %v571_v13  ;;  %v1176_v5 = vpop.f32.mrb[57].mxu1 }
 0x2d1   :  { %v1177_v62 = vadd.f32 %v1176_v5, %v566_v14 }
 0x2d2   :  { %v1304_v16 = vmax.f32 %v1182_v52, 0.0 }
 0x2d3   :  { %v1303_v19 = vmax.f32 %v1177_v62, 0.0 }
 0x2d4   :  { %1336 = vst [vmem:[#allocation5 + $0xe8] sm:$0xff] %v1304_v16 }
 0x2d5   :  { %1335 = vst [vmem:[#allocation5 + $0xd0] sm:$0xff] %v1303_v19 }
 0x2d7   :  { %v1785_v10 = vpop.f32.mrb[58].mxu1 }
 0x2d8   :  { %v1192_v23 = vadd.f32 %v1785_v10, %v581_v60  ;;  %v1186_v55 = vpop.f32.mrb[59].mxu1 }
 0x2d9   :  { %v1187_v28 = vadd.f32 %v1186_v55, %v576_v21 }
 0x2da   :  { %v1306_v29 = vmax.f32 %v1192_v23, 0.0 }
 0x2db   :  { %v1305_v18 = vmax.f32 %v1187_v28, 0.0 }
 0x2dc   :  { %1338 = vst [vmem:[#allocation5 + $0x118] sm:$0xff] %v1306_v29 }
 0x2dd   :  { %1337 = vst [vmem:[#allocation5 + $0x100] sm:$0xff] %v1305_v18 }
 0x2df   :  { %v1788_v6 = vpop.f32.mrb[60].mxu1 }
 0x2e0   :  { %v1202_v30 = vadd.f32 %v1788_v6, %v591_v3  ;;  %v1196_v35 = vpop.f32.mrb[61].mxu1 }
 0x2e1   :  { %v1197_v38 = vadd.f32 %v1196_v35, %v586_v12 }
 0x2e2   :  { %v1308_v1 = vmax.f32 %v1202_v30, 0.0 }
 0x2e3   :  { %v1307_v22 = vmax.f32 %v1197_v38, 0.0 }
 0x2e4   :  { %1340 = vst [vmem:[#allocation5 + $0x148] sm:$0xff] %v1308_v1 }
 0x2e5   :  { %1339 = vst [vmem:[#allocation5 + $0x130] sm:$0xff] %v1307_v22 }
 0x2e7   :  { %v1791_v39 = vpop.f32.mrb[62].mxu1 }
 0x2e8   :  { %v1212_v15 = vadd.f32 %v1791_v39, %v601_v40  ;;  %v1206_v48 = vpop.f32.mrb[63].mxu1 }
 0x2e9   :  { %v1207_v11 = vadd.f32 %v1206_v48, %v596_v44 }
 0x2ea   :  { %v1310_v51 = vmax.f32 %v1212_v15, 0.0 }
 0x2eb   :  { %v1309_v34 = vmax.f32 %v1207_v11, 0.0 }
 0x2ec   :  { %1342 = vst [vmem:[#allocation5 + $0x178] sm:$0xff] %v1310_v51 }
 0x2ed   :  { %1341 = vst [vmem:[#allocation5 + $0x160] sm:$0xff] %v1309_v34 }
 0x2ef   :  { %v1794_v53 = vpop.f32.mrb[0].mxu1 }
 0x2f0   :  { %v1952_v0 = vadd.f32 %v1794_v53, %v2671_v17  ;;  %v1216_v25 = vpop.f32.mrb[1].mxu1 }
 0x2f1   :  { %v1953_v54 = vadd.f32 %v1216_v25, %v2671_v17 }
 0x2f2   :  { %v1312_v57 = vmax.f32 %v1952_v0, 0.0 }
 0x2f3   :  { %v1311_v33 = vmax.f32 %v1953_v54, 0.0 }
 0x2f4   :  { %1344 = vst [vmem:[#allocation5 + $0x1a8] sm:$0xff] %v1312_v57 }
 0x2f5   :  { %1343 = vst [vmem:[#allocation5 + $0x190] sm:$0xff] %v1311_v33 }
 0x2f7   :  { %v1797_v58 = vpop.f32.mrb[2].mxu1 }
 0x2f8   :  { %v1954_v24 = vadd.f32 %v1797_v58, %v2671_v17  ;;  %v1226_v26 = vpop.f32.mrb[3].mxu1 }
 0x2f9   :  { %v1955_v32 = vadd.f32 %v1226_v26, %v2671_v17 }
 0x2fa   :  { %v1314_v20 = vmax.f32 %v1954_v24, 0.0 }
 0x2fb   :  { %v1313_v43 = vmax.f32 %v1955_v32, 0.0 }
 0x2fc   :  { %1346 = vst [vmem:[#allocation5 + $0x1d8] sm:$0xff] %v1314_v20 }
 0x2fd   :  { %1345 = vst [vmem:[#allocation5 + $0x1c0] sm:$0xff] %v1313_v43 }
 0x2ff   :  { %v1800_v27 = vpop.f32.mrb[4].mxu1 }
 0x300   :  { %v1956_v45 = vadd.f32 %v1800_v27, %v2671_v17  ;;  %v1236_v47 = vpop.f32.mrb[5].mxu1 }
 0x301   :  { %v1957_v61 = vadd.f32 %v1236_v47, %v2671_v17 }
 0x302   :  { %v1316_v42 = vmax.f32 %v1956_v45, 0.0 }
 0x303   :  { %v1315_v36 = vmax.f32 %v1957_v61, 0.0 }
 0x304   :  { %1348 = vst [vmem:[#allocation5 + $0x208] sm:$0xff] %v1316_v42 }
 0x305   :  { %1347 = vst [vmem:[#allocation5 + $0x1f0] sm:$0xff] %v1315_v36 }
 0x307   :  { %v1803_v41 = vpop.f32.mrb[6].mxu1 }
 0x308   :  { %v1958_v31 = vadd.f32 %v1803_v41, %v2671_v17  ;;  %v1246_v63 = vpop.f32.mrb[7].mxu1 }
 0x309   :  { %v1959_v4 = vadd.f32 %v1246_v63, %v2671_v17 }
 0x30a   :  { %v1318_v2 = vmax.f32 %v1958_v31, 0.0 }
 0x30b   :  { %v1317_v37 = vmax.f32 %v1959_v4, 0.0 }
 0x30c   :  { %1350 = vst [vmem:[#allocation5 + $0x238] sm:$0xff] %v1318_v2 }
 0x30d   :  { %1349 = vst [vmem:[#allocation5 + $0x220] sm:$0xff] %v1317_v37 }
 0x30f   :  { %v1806_v7 = vpop.f32.mrb[8].mxu1 }
 0x310   :  { %v1960_v56 = vadd.f32 %v1806_v7, %v2671_v17  ;;  %v1256_v49 = vpop.f32.mrb[9].mxu1 }
 0x311   :  { %v1961_v8 = vadd.f32 %v1256_v49, %v2671_v17 }
 0x312   :  { %v1320_v59 = vmax.f32 %v1960_v56, 0.0 }
 0x313   :  { %v1319_v50 = vmax.f32 %v1961_v8, 0.0 }
 0x314   :  { %1352 = vst [vmem:[#allocation5 + $0x268] sm:$0xff] %v1320_v59 }
 0x315   :  { %1351 = vst [vmem:[#allocation5 + $0x250] sm:$0xff] %v1319_v50 }
 0x317   :  { %v1809_v9 = vpop.f32.mrb[10].mxu1 }
 0x318   :  { %v1962_v13 = vadd.f32 %v1809_v9, %v2671_v17  ;;  %v1266_v14 = vpop.f32.mrb[11].mxu1 }
 0x319   :  { %v1963_v46 = vadd.f32 %v1266_v14, %v2671_v17 }
 0x31a   :  { %v1322_v52 = vmax.f32 %v1962_v13, 0.0 }
 0x31b   :  { %v1321_v5 = vmax.f32 %v1963_v46, 0.0 }
 0x31c   :  { %1354 = vst [vmem:[#allocation5 + $0x298] sm:$0xff] %v1322_v52 }
 0x31d   :  { %1353 = vst [vmem:[#allocation5 + $0x280] sm:$0xff] %v1321_v5 }
 0x31f   :  { %v1812_v62 = vpop.f32.mrb[12].mxu1 }
 0x320   :  { %v1964_v16 = vadd.f32 %v1812_v62, %v2671_v17  ;;  %v1276_v19 = vpop.f32.mrb[13].mxu1 }
 0x321   :  { %v1965_v60 = vadd.f32 %v1276_v19, %v2671_v17 }
 0x322   :  { %v1324_v21 = vmax.f32 %v1964_v16, 0.0 }
 0x323   :  { %v1323_v10 = vmax.f32 %v1965_v60, 0.0 }
 0x324   :  { %1356 = vst [vmem:[#allocation5 + $0x2c8] sm:$0xff] %v1324_v21 }
 0x325   :  { %1355 = vst [vmem:[#allocation5 + $0x2b0] sm:$0xff] %v1323_v10 }
 0x327   :  { %v1815_v23 = vpop.f32.mrb[14].mxu1 }
 0x328   :  { %v1966_v55 = vadd.f32 %v1815_v23, %v2671_v17  ;;  %v1286_v28 = vpop.f32.mrb[15].mxu1 }
 0x329   :  { %v1967_v29 = vadd.f32 %v1286_v28, %v2671_v17 }
 0x32a   :  { %v1326_v18 = vmax.f32 %v1966_v55, 0.0 }
 0x32b   :  { %v1325_v3 = vmax.f32 %v1967_v29, 0.0 }
 0x32c   :  { %1358 = vst [vmem:[#allocation5 + $0x2f8] sm:$0xff] %v1326_v18 }
 0x32d   :  { %1357 = vst [vmem:[#allocation5 + $0x2e0] sm:$0xff] %v1325_v3 }
 0x32e   :  { %2022 = shalt.err (!%p2019_p12)
}
 0x32f   :  { %s2023_s7 = scalar_lea.hbm %s2734_s4, 12288 }
 0x330   :  { %p2024_p13 = scmp.ne.s32.totalorder %s2734_s4, %s2023_s7  ;;  %p2027_p0 = scmp.lt.u32.totalorder %s2023_s7, %s2734_s4 }
 0x332   :  { %p2029_p1 = pnand %p2027_p0, %p2024_p13 }
 0x334   :  { %2032 = shalt.err (!%p2029_p1)
}
 0x335   :  { %1370 = dma.vmem_to_hbm [thread:$0]  %s1365_s29, 12288, %s2734_s4, [#allocation4], %s2038_s25, %s2038_s25, %s2039_s26  }
 0x336   :  { %2035 = dma.done.wait [#allocation4], 12288  }
 0x337   :  { %2036 = vsyncadd [#allocation4], 4294955008 }
 0x338   :  { %1374 = vsyncpa [#allocation3], 1 }
 0x339   :  { %1375 = vsyncpa [#allocation4], 1 }

</bundles_post_ra>
